<compile_context>
chip_gen: v5e
topology: v5e:2x2
jax: 0.10.0
libtpu: 0.0.40
codegen_flags: <defaults>
</compile_context>

<pallas_src>
import jax
import jax.numpy as jnp
from jax.experimental import pallas as pl
from jax.experimental.pallas import tpu as pltpu

SELU_ALPHA = 1.6732632423543772
SELU_SCALE = 1.0507009873554805
BN_EPS = 1e-5


def _selu(x):
    # Clamp the exp argument so the unselected branch stays finite; exp(min(x,0))-1
    # equals expm1(x) on the selected (x<=0) branch to well within f32 tolerance.
    neg = SELU_ALPHA * (jnp.exp(jnp.minimum(x, 0.0)) - 1.0)
    return SELU_SCALE * jnp.where(x > 0, x, neg)


def residual_block_forward(x_nchw, params):
    """x_nchw: (N, Cin, H, W) float32 (PyTorch layout). Returns (N, Cout, H, W//3)."""
    x = jnp.transpose(x_nchw, (0, 2, 3, 1)).astype(jnp.float32)        # NHWC
    n, h, w, cin = x.shape
    cout = params["w1"].shape[0]
    h1 = h + 1                      # conv1 output height (padding (1,1), kernel (2,3))
    wo = w // 3                     # MaxPool2d((1,3)) floor mode
    kt = 6                          # taps per (2,3) window
    rows = n * h1 * w               # flattened conv1-output position axis
    rows_pad = ((rows + 127) // 128) * 128
    out_cols = n * h * wo
    kfeat = kt * cin + 1            # 6*Cin patch features + 1 bias column
    kpad = ((kfeat + 7) // 8) * 8

    # ---- wrapper-side padding + shared im2col (conv1 & downsample share it) ---
    xp = jnp.pad(x, ((0, 0), (1, 1), (1, 1), (0, 0)))                  # (N,H+2,W+2,Cin)
    p1 = jnp.concatenate(
        [xp[:, kh:kh + h1, kw:kw + w, :] for kh in range(2) for kw in range(3)],
        axis=-1,
    ).reshape(rows, kt * cin)                                          # (rows, 6*Cin)
    # transposed layout: features on sublanes, positions on lanes; +ones row for bias
    p1t = jnp.concatenate([p1.T, jnp.ones((1, rows), jnp.float32)], axis=0)
    p1t = jnp.pad(p1t, ((0, kpad - kfeat), (0, rows_pad - rows)))      # (kpad, rows_pad)

    # fused conv1 + downsample weights, (2*Cout, kpad); bias column carries
    # [b1 ; bd + b2] (b2 is constant over positions, so it rides with the residual)
    w1f = jnp.transpose(params["w1"], (2, 3, 1, 0)).astype(jnp.float32).reshape(kt * cin, cout)
    wd_hwio = jnp.transpose(params["wd"], (2, 3, 1, 0)).astype(jnp.float32)  # (1,3,Cin,Cout)
    wdf = jnp.concatenate([jnp.zeros_like(wd_hwio), wd_hwio], axis=0).reshape(kt * cin, cout)
    bias_col = jnp.concatenate(
        [params["b1"], params["bd"] + params["b2"]]).astype(jnp.float32)
    wmat = jnp.concatenate([jnp.concatenate([w1f, wdf], axis=1),
                            bias_col[None, :]], axis=0)                # (kfeat, 2*Cout)
    wcomb = jnp.pad(wmat, ((0, kpad - kfeat), (0, 0))).T               # (2*Cout, kpad)

    # conv2 weights per tap as (Cout_out, Cout_in), tap order (kh, kw)
    w2t = jnp.transpose(params["w2"], (2, 3, 0, 1)).astype(jnp.float32).reshape(kt, cout, cout)

    # BN2 affine packed: gb[0] = gamma, gb[1] = beta, each (Cout, 1)
    gb = jnp.stack([params["g2"], params["be2"]]).astype(jnp.float32).reshape(2, cout, 1)

    # conv2 W-boundary masks over the flat (n, h1, w) position axis
    ww = jnp.arange(rows_pad, dtype=jnp.int32) % w
    valid = jnp.arange(rows_pad) < rows
    mask0 = ((ww != 0) & valid).astype(jnp.float32)         # kw = 0 needs col ww-1
    mask2 = ((ww != w - 1) & valid).astype(jnp.float32)     # kw = 2 needs col ww+1
    masks = jnp.stack([mask0, mask2]).reshape(2, 1, rows_pad)

    # pool/valid-row selection: one-hot (rows_pad, out_cols) picking flat position
    # nn*h1*w + hh*w + 3*j for output (nn, hh, j); also drops the invalid hh = H rows.
    o_idx = jnp.arange(out_cols)
    jj = o_idx % wo
    hh = (o_idx // wo) % h
    nn = o_idx // (wo * h)
    src = nn * (h1 * w) + hh * w + 3 * jj
    ssel = jax.nn.one_hot(src, rows_pad, axis=0, dtype=jnp.float32)    # (rows_pad, out_cols)

    inv_count = 1.0 / float(rows)

    def kernel(p1t_ref, wcomb_ref, w2_ref, gb_ref, mask_ref, ssel_ref, o_ref):
        # fused conv1 + downsample (+ all biases via the ones row): one MXU matmul
        z = jnp.dot(wcomb_ref[...], p1t_ref[...],
                    preferred_element_type=jnp.float32)                # (2*Cout, rows_pad)
        z1 = z[0:cout, :]              # conv1 + b1
        zd = z[cout:2 * cout, :]       # downsample + bd + b2 (residual, incl. conv2 bias)

        # BN2 (training-mode batch stats), one pass: var = E[x^2] - mean^2.
        s = jnp.sum(z1, axis=1, keepdims=True)
        ss = jnp.sum(z1 * z1, axis=1, keepdims=True)
        mean = s * inv_count
        var = ss * inv_count - mean * mean
        a = jax.lax.rsqrt(var + BN_EPS) * gb_ref[0]                    # (Cout, 1)
        b = gb_ref[1] - mean * a
        hact = _selu(z1 * a + b)                                       # (Cout, rows_pad)

        # conv2 (2,3), padding (0,1): kw taps via lane rolls + boundary masks,
        # kh=1 taps reuse the same slabs and roll their summed contribution by W.
        mask_l = mask_ref[0]                                           # (1, rows_pad)
        mask_r = mask_ref[1]
        t_m = pltpu.roll(hact, shift=1, axis=1) * mask_l               # source col ww-1
        t_p = pltpu.roll(hact, shift=rows_pad - 1, axis=1) * mask_r    # source col ww+1
        w2 = w2_ref[...]
        row0 = (jnp.dot(w2[0], t_m, preferred_element_type=jnp.float32)
                + jnp.dot(w2[1], hact, preferred_element_type=jnp.float32)
                + jnp.dot(w2[2], t_p, preferred_element_type=jnp.float32))
        row1 = (jnp.dot(w2[3], t_m, preferred_element_type=jnp.float32)
                + jnp.dot(w2[4], hact, preferred_element_type=jnp.float32)
                + jnp.dot(w2[5], t_p, preferred_element_type=jnp.float32))
        y = zd + row0 + pltpu.roll(row1, shift=rows_pad - w, axis=1)   # (Cout, rows_pad)

        # MaxPool2d((1,3)), floor mode: windowed max via 2 lane rolls, then one
        # selection matmul that picks window starts and drops invalid h1 rows.
        m = jnp.maximum(y, pltpu.roll(y, shift=rows_pad - 1, axis=1))  # max(y[r], y[r+1])
        m = jnp.maximum(m, pltpu.roll(y, shift=rows_pad - 2, axis=1))  # ... y[r+2]
        o_ref[...] = jnp.dot(m, ssel_ref[...],
                             preferred_element_type=jnp.float32)       # (Cout, out_cols)

    args = (p1t, wcomb, w2t, gb, masks, ssel)

    def full_spec(a):
        nd = a.ndim
        return pl.BlockSpec(a.shape, lambda i, _nd=nd: (0,) * _nd)

    y2d = pl.pallas_call(
        kernel,
        out_shape=jax.ShapeDtypeStruct((cout, out_cols), jnp.float32),
        grid=(1,),
        in_specs=[full_spec(a) for a in args],
        out_specs=pl.BlockSpec((cout, out_cols), lambda i: (0, 0)),
        compiler_params=pltpu.CompilerParams(vmem_limit_bytes=32 * 1024 * 1024),
    )(*args)

    # (Cout, N*H*Wo) -> NCHW
    return jnp.transpose(y2d.reshape(cout, n, h, wo), (1, 0, 2, 3))


# ------------------------------ pure-JAX reference ----------------------------

def reference_forward(x, p):
    def conv(xi, w, b, pad):
        y = jax.lax.conv_general_dilated(
            xi, w, (1, 1), [(pad[0], pad[0]), (pad[1], pad[1])],
            dimension_numbers=("NCHW", "OIHW", "NCHW"))
        return y + b[None, :, None, None]

    out = conv(x, p["w1"], p["b1"], (1, 1))
    mean = out.mean(axis=(0, 2, 3), keepdims=True)
    var = ((out - mean) ** 2).mean(axis=(0, 2, 3), keepdims=True)
    out = (out - mean) / jnp.sqrt(var + BN_EPS)
    out = out * p["g2"][None, :, None, None] + p["be2"][None, :, None, None]
    out = jax.nn.selu(out)
    out = conv(out, p["w2"], p["b2"], (0, 1))
    ident = conv(x, p["wd"], p["bd"], (0, 1))
    out = out + ident
    n, c, h, w = out.shape
    wo = w // 3
    return out[:, :, :, :wo * 3].reshape(n, c, h, wo, 3).max(axis=4)


# ----------------------------------- main -------------------------------------

if __name__ == "__main__":
    # nb_filts = [4, 8] => Cin=4, Cout=8 (downsample path active)
    N, CIN, COUT, H, W = 2, 4, 8, 16, 16

    key = jax.random.PRNGKey(0)
    ks = jax.random.split(key, 10)
    params = {
        "w1": jax.random.normal(ks[0], (COUT, CIN, 2, 3), jnp.float32) * 0.1,
        "b1": jax.random.normal(ks[1], (COUT,), jnp.float32) * 0.1,
        "g2": 1.0 + 0.1 * jax.random.normal(ks[2], (COUT,), jnp.float32),
        "be2": 0.1 * jax.random.normal(ks[3], (COUT,), jnp.float32),
        "w2": jax.random.normal(ks[4], (COUT, COUT, 2, 3), jnp.float32) * 0.1,
        "b2": jax.random.normal(ks[5], (COUT,), jnp.float32) * 0.1,
        "wd": jax.random.normal(ks[6], (COUT, CIN, 1, 3), jnp.float32) * 0.1,
        "bd": jax.random.normal(ks[7], (COUT,), jnp.float32) * 0.1,
    }
    x = jax.random.normal(ks[8], (N, CIN, H, W), jnp.float32)

    out = jax.block_until_ready(residual_block_forward(x, params))
    ref = jax.block_until_ready(reference_forward(x, params))

    assert out.shape == (N, COUT, H, W // 3), out.shape
    assert jnp.allclose(out, ref, atol=1e-3, rtol=1e-3), (
        float(jnp.max(jnp.abs(out - ref))))

    print("KERNEL_OK")
</pallas_src>

<mosaic_0001>
module attributes {stable_mosaic.version = 11 : i64} {
  func.func @kernel(%arg0: i32, %arg1: memref<32x640xf32, #tpu.memory_space<vmem>>, %arg2: memref<16x32xf32, #tpu.memory_space<vmem>>, %arg3: memref<6x8x8xf32, #tpu.memory_space<vmem>>, %arg4: memref<2x8x1xf32, #tpu.memory_space<vmem>>, %arg5: memref<2x1x640xf32, #tpu.memory_space<vmem>>, %arg6: memref<640x160xf32, #tpu.memory_space<vmem>>, %arg7: memref<8x160xf32, #tpu.memory_space<vmem>>) attributes {dimension_semantics = [#tpu.dimension_semantics<arbitrary>], iteration_bounds = array<i64: 1>, scalar_prefetch = 0 : i64, scratch_operands = 0 : i64, tpu.core_type = #tpu.core_type<tc>, window_params = [{pipeline_mode = #tpu.pipeline_mode<synchronous>, transform_indices = @transform_0, window_bounds = array<i64: 32, 640>}, {pipeline_mode = #tpu.pipeline_mode<synchronous>, transform_indices = @transform_1, window_bounds = array<i64: 16, 32>}, {pipeline_mode = #tpu.pipeline_mode<synchronous>, transform_indices = @transform_2, window_bounds = array<i64: 6, 8, 8>}, {pipeline_mode = #tpu.pipeline_mode<synchronous>, transform_indices = @transform_3, window_bounds = array<i64: 2, 8, 1>}, {pipeline_mode = #tpu.pipeline_mode<synchronous>, transform_indices = @transform_4, window_bounds = array<i64: 2, 1, 640>}, {pipeline_mode = #tpu.pipeline_mode<synchronous>, transform_indices = @transform_5, window_bounds = array<i64: 640, 160>}, {pipeline_mode = #tpu.pipeline_mode<synchronous>, transform_indices = @transform_6, window_bounds = array<i64: 8, 160>}]} {
    %c0 = arith.constant 0 : index
    %c0_0 = arith.constant 0 : index
    %0 = vector.load %arg2[%c0, %c0_0] : memref<16x32xf32, #tpu.memory_space<vmem>>, vector<16x32xf32>
    %c0_1 = arith.constant 0 : index
    %c0_2 = arith.constant 0 : index
    %1 = vector.load %arg1[%c0_1, %c0_2] : memref<32x640xf32, #tpu.memory_space<vmem>>, vector<32x640xf32>
    %cst = arith.constant dense<0.000000e+00> : vector<16x640xf32>
    %2 = tpu.matmul %0, %1, %cst {dimension_numbers = #tpu.dot_dimension_numbers<[1], [0], [0], [1], [0, 0, 1, 1], [], []>} : vector<16x32xf32>, vector<32x640xf32>, vector<16x640xf32> -> vector<16x640xf32>
    %3 = vector.extract_strided_slice %2 {offsets = [0, 0], sizes = [8, 640], strides = [1, 1]} : vector<16x640xf32> to vector<8x640xf32>
    %4 = vector.extract_strided_slice %2 {offsets = [8, 0], sizes = [8, 640], strides = [1, 1]} : vector<16x640xf32> to vector<8x640xf32>
    %cst_3 = arith.constant dense<0.000000e+00> : vector<8xf32>
    %5 = vector.multi_reduction <add>, %3, %cst_3 [1] : vector<8x640xf32> to vector<8xf32>
    %6 = vector.shape_cast %5 : vector<8xf32> to vector<8x1xf32>
    %7 = arith.mulf %3, %3 : vector<8x640xf32>
    %cst_4 = arith.constant dense<0.000000e+00> : vector<8xf32>
    %8 = vector.multi_reduction <add>, %7, %cst_4 [1] : vector<8x640xf32> to vector<8xf32>
    %9 = vector.shape_cast %8 : vector<8xf32> to vector<8x1xf32>
    %cst_5 = arith.constant 0.0018382353 : f32
    %10 = vector.broadcast %cst_5 : f32 to vector<8x1xf32>
    %11 = arith.mulf %6, %10 : vector<8x1xf32>
    %cst_6 = arith.constant 0.0018382353 : f32
    %12 = vector.broadcast %cst_6 : f32 to vector<8x1xf32>
    %13 = arith.mulf %9, %12 : vector<8x1xf32>
    %14 = arith.mulf %11, %11 : vector<8x1xf32>
    %15 = arith.subf %13, %14 : vector<8x1xf32>
    %cst_7 = arith.constant 9.99999974E-6 : f32
    %16 = vector.broadcast %cst_7 : f32 to vector<8x1xf32>
    %17 = arith.addf %15, %16 : vector<8x1xf32>
    %18 = math.rsqrt %17 : vector<8x1xf32>
    %c0_8 = arith.constant 0 : index
    %c0_9 = arith.constant 0 : index
    %c0_10 = arith.constant 0 : index
    %19 = vector.load %arg4[%c0_8, %c0_9, %c0_10] : memref<2x8x1xf32, #tpu.memory_space<vmem>>, vector<1x8x1xf32>
    %20 = vector.shape_cast %19 : vector<1x8x1xf32> to vector<8x1xf32>
    %21 = arith.mulf %18, %20 : vector<8x1xf32>
    %c1 = arith.constant 1 : index
    %c0_11 = arith.constant 0 : index
    %c0_12 = arith.constant 0 : index
    %22 = vector.load %arg4[%c1, %c0_11, %c0_12] : memref<2x8x1xf32, #tpu.memory_space<vmem>>, vector<1x8x1xf32>
    %23 = vector.shape_cast %22 : vector<1x8x1xf32> to vector<8x1xf32>
    %24 = arith.mulf %11, %21 : vector<8x1xf32>
    %25 = arith.subf %23, %24 : vector<8x1xf32>
    %26 = vector.broadcast %21 : vector<8x1xf32> to vector<8x640xf32>
    %27 = arith.mulf %3, %26 : vector<8x640xf32>
    %28 = vector.broadcast %25 : vector<8x1xf32> to vector<8x640xf32>
    %29 = arith.addf %27, %28 : vector<8x640xf32>
    %cst_13 = arith.constant 0.000000e+00 : f32
    %30 = vector.broadcast %cst_13 : f32 to vector<8x640xf32>
    %31 = arith.minimumf %29, %30 : vector<8x640xf32>
    %32 = math.exp %31 : vector<8x640xf32>
    %cst_14 = arith.constant 1.000000e+00 : f32
    %33 = vector.broadcast %cst_14 : f32 to vector<8x640xf32>
    %34 = arith.subf %32, %33 : vector<8x640xf32>
    %cst_15 = arith.constant 1.67326319 : f32
    %35 = vector.broadcast %cst_15 : f32 to vector<8x640xf32>
    %36 = arith.mulf %35, %34 : vector<8x640xf32>
    %cst_16 = arith.constant 0.000000e+00 : f32
    %37 = vector.broadcast %cst_16 : f32 to vector<8x640xf32>
    %38 = arith.cmpf ogt, %29, %37 : vector<8x640xf32>
    %39 = arith.select %38, %29, %36 : vector<8x640xi1>, vector<8x640xf32>
    %cst_17 = arith.constant 1.05070102 : f32
    %40 = vector.broadcast %cst_17 : f32 to vector<8x640xf32>
    %41 = arith.mulf %40, %39 : vector<8x640xf32>
    %c0_18 = arith.constant 0 : index
    %c0_19 = arith.constant 0 : index
    %c0_20 = arith.constant 0 : index
    %42 = vector.load %arg5[%c0_18, %c0_19, %c0_20] : memref<2x1x640xf32, #tpu.memory_space<vmem>>, vector<1x1x640xf32>
    %43 = vector.shape_cast %42 : vector<1x1x640xf32> to vector<1x640xf32>
    %c1_21 = arith.constant 1 : index
    %c0_22 = arith.constant 0 : index
    %c0_23 = arith.constant 0 : index
    %44 = vector.load %arg5[%c1_21, %c0_22, %c0_23] : memref<2x1x640xf32, #tpu.memory_space<vmem>>, vector<1x1x640xf32>
    %45 = vector.shape_cast %44 : vector<1x1x640xf32> to vector<1x640xf32>
    %c1_i32 = arith.constant 1 : i32
    %46 = tpu.dynamic_rotate %41 by %c1_i32 dim 1 : vector<8x640xf32>, i32 -> vector<8x640xf32>
    %47 = vector.broadcast %43 : vector<1x640xf32> to vector<8x640xf32>
    %48 = arith.mulf %46, %47 : vector<8x640xf32>
    %c639_i32 = arith.constant 639 : i32
    %49 = tpu.dynamic_rotate %41 by %c639_i32 dim 1 : vector<8x640xf32>, i32 -> vector<8x640xf32>
    %50 = vector.broadcast %45 : vector<1x640xf32> to vector<8x640xf32>
    %51 = arith.mulf %49, %50 : vector<8x640xf32>
    %c0_24 = arith.constant 0 : index
    %c0_25 = arith.constant 0 : index
    %c0_26 = arith.constant 0 : index
    %52 = vector.load %arg3[%c0_24, %c0_25, %c0_26] : memref<6x8x8xf32, #tpu.memory_space<vmem>>, vector<6x8x8xf32>
    %53 = vector.extract_strided_slice %52 {offsets = [0, 0, 0], sizes = [1, 8, 8], strides = [1, 1, 1]} : vector<6x8x8xf32> to vector<1x8x8xf32>
    %54 = vector.shape_cast %53 : vector<1x8x8xf32> to vector<8x8xf32>
    %cst_27 = arith.constant dense<0.000000e+00> : vector<8x640xf32>
    %55 = tpu.matmul %54, %48, %cst_27 {dimension_numbers = #tpu.dot_dimension_numbers<[1], [0], [0], [1], [0, 0, 1, 1], [], []>} : vector<8x8xf32>, vector<8x640xf32>, vector<8x640xf32> -> vector<8x640xf32>
    %56 = vector.extract_strided_slice %52 {offsets = [1, 0, 0], sizes = [1, 8, 8], strides = [1, 1, 1]} : vector<6x8x8xf32> to vector<1x8x8xf32>
    %57 = vector.shape_cast %56 : vector<1x8x8xf32> to vector<8x8xf32>
    %cst_28 = arith.constant dense<0.000000e+00> : vector<8x640xf32>
    %58 = tpu.matmul %57, %41, %cst_28 {dimension_numbers = #tpu.dot_dimension_numbers<[1], [0], [0], [1], [0, 0, 1, 1], [], []>} : vector<8x8xf32>, vector<8x640xf32>, vector<8x640xf32> -> vector<8x640xf32>
    %59 = arith.addf %55, %58 : vector<8x640xf32>
    %60 = vector.extract_strided_slice %52 {offsets = [2, 0, 0], sizes = [1, 8, 8], strides = [1, 1, 1]} : vector<6x8x8xf32> to vector<1x8x8xf32>
    %61 = vector.shape_cast %60 : vector<1x8x8xf32> to vector<8x8xf32>
    %cst_29 = arith.constant dense<0.000000e+00> : vector<8x640xf32>
    %62 = tpu.matmul %61, %51, %cst_29 {dimension_numbers = #tpu.dot_dimension_numbers<[1], [0], [0], [1], [0, 0, 1, 1], [], []>} : vector<8x8xf32>, vector<8x640xf32>, vector<8x640xf32> -> vector<8x640xf32>
    %63 = arith.addf %59, %62 : vector<8x640xf32>
    %64 = vector.extract_strided_slice %52 {offsets = [3, 0, 0], sizes = [1, 8, 8], strides = [1, 1, 1]} : vector<6x8x8xf32> to vector<1x8x8xf32>
    %65 = vector.shape_cast %64 : vector<1x8x8xf32> to vector<8x8xf32>
    %cst_30 = arith.constant dense<0.000000e+00> : vector<8x640xf32>
    %66 = tpu.matmul %65, %48, %cst_30 {dimension_numbers = #tpu.dot_dimension_numbers<[1], [0], [0], [1], [0, 0, 1, 1], [], []>} : vector<8x8xf32>, vector<8x640xf32>, vector<8x640xf32> -> vector<8x640xf32>
    %67 = vector.extract_strided_slice %52 {offsets = [4, 0, 0], sizes = [1, 8, 8], strides = [1, 1, 1]} : vector<6x8x8xf32> to vector<1x8x8xf32>
    %68 = vector.shape_cast %67 : vector<1x8x8xf32> to vector<8x8xf32>
    %cst_31 = arith.constant dense<0.000000e+00> : vector<8x640xf32>
    %69 = tpu.matmul %68, %41, %cst_31 {dimension_numbers = #tpu.dot_dimension_numbers<[1], [0], [0], [1], [0, 0, 1, 1], [], []>} : vector<8x8xf32>, vector<8x640xf32>, vector<8x640xf32> -> vector<8x640xf32>
    %70 = arith.addf %66, %69 : vector<8x640xf32>
    %71 = vector.extract_strided_slice %52 {offsets = [5, 0, 0], sizes = [1, 8, 8], strides = [1, 1, 1]} : vector<6x8x8xf32> to vector<1x8x8xf32>
    %72 = vector.shape_cast %71 : vector<1x8x8xf32> to vector<8x8xf32>
    %cst_32 = arith.constant dense<0.000000e+00> : vector<8x640xf32>
    %73 = tpu.matmul %72, %51, %cst_32 {dimension_numbers = #tpu.dot_dimension_numbers<[1], [0], [0], [1], [0, 0, 1, 1], [], []>} : vector<8x8xf32>, vector<8x640xf32>, vector<8x640xf32> -> vector<8x640xf32>
    %74 = arith.addf %70, %73 : vector<8x640xf32>
    %75 = arith.addf %4, %63 : vector<8x640xf32>
    %c624_i32 = arith.constant 624 : i32
    %76 = tpu.dynamic_rotate %74 by %c624_i32 dim 1 : vector<8x640xf32>, i32 -> vector<8x640xf32>
    %77 = arith.addf %75, %76 : vector<8x640xf32>
    %c639_i32_33 = arith.constant 639 : i32
    %78 = tpu.dynamic_rotate %77 by %c639_i32_33 dim 1 : vector<8x640xf32>, i32 -> vector<8x640xf32>
    %79 = arith.maximumf %77, %78 : vector<8x640xf32>
    %c638_i32 = arith.constant 638 : i32
    %80 = tpu.dynamic_rotate %77 by %c638_i32 dim 1 : vector<8x640xf32>, i32 -> vector<8x640xf32>
    %81 = arith.maximumf %79, %80 : vector<8x640xf32>
    %c0_34 = arith.constant 0 : index
    %c0_35 = arith.constant 0 : index
    %82 = vector.load %arg6[%c0_34, %c0_35] : memref<640x160xf32, #tpu.memory_space<vmem>>, vector<640x160xf32>
    %cst_36 = arith.constant dense<0.000000e+00> : vector<8x160xf32>
    %83 = tpu.matmul %81, %82, %cst_36 {dimension_numbers = #tpu.dot_dimension_numbers<[1], [0], [0], [1], [0, 0, 1, 1], [], []>} : vector<8x640xf32>, vector<640x160xf32>, vector<8x160xf32> -> vector<8x160xf32>
    %c0_37 = arith.constant 0 : index
    %c0_38 = arith.constant 0 : index
    %84 = vector.load %arg7[%c0_37, %c0_38] : memref<8x160xf32, #tpu.memory_space<vmem>>, vector<8x160xf32>
    tpu.vector_store %arg7[%c0_37, %c0_38], %83 {strides = array<i32>} : memref<8x160xf32, #tpu.memory_space<vmem>>, vector<8x160xf32>,
    return
  }
  func.func @transform_0(%arg0: i32) -> (i32, i32) {
    %c0_i32 = arith.constant 0 : i32
    %c0_i32_0 = arith.constant 0 : i32
    %c0_i32_1 = arith.constant 0 : i32
    return %c0_i32, %c0_i32_0 : i32, i32
  }
  func.func @transform_1(%arg0: i32) -> (i32, i32) {
    %c0_i32 = arith.constant 0 : i32
    %c0_i32_0 = arith.constant 0 : i32
    %c0_i32_1 = arith.constant 0 : i32
    return %c0_i32, %c0_i32_0 : i32, i32
  }
  func.func @transform_2(%arg0: i32) -> (i32, i32, i32) {
    %c0_i32 = arith.constant 0 : i32
    %c0_i32_0 = arith.constant 0 : i32
    %c0_i32_1 = arith.constant 0 : i32
    %c0_i32_2 = arith.constant 0 : i32
    return %c0_i32, %c0_i32_0, %c0_i32_1 : i32, i32, i32
  }
  func.func @transform_3(%arg0: i32) -> (i32, i32, i32) {
    %c0_i32 = arith.constant 0 : i32
    %c0_i32_0 = arith.constant 0 : i32
    %c0_i32_1 = arith.constant 0 : i32
    %c0_i32_2 = arith.constant 0 : i32
    return %c0_i32, %c0_i32_0, %c0_i32_1 : i32, i32, i32
  }
  func.func @transform_4(%arg0: i32) -> (i32, i32, i32) {
    %c0_i32 = arith.constant 0 : i32
    %c0_i32_0 = arith.constant 0 : i32
    %c0_i32_1 = arith.constant 0 : i32
    %c0_i32_2 = arith.constant 0 : i32
    return %c0_i32, %c0_i32_0, %c0_i32_1 : i32, i32, i32
  }
  func.func @transform_5(%arg0: i32) -> (i32, i32) {
    %c0_i32 = arith.constant 0 : i32
    %c0_i32_0 = arith.constant 0 : i32
    %c0_i32_1 = arith.constant 0 : i32
    return %c0_i32, %c0_i32_0 : i32, i32
  }
  func.func @transform_6(%arg0: i32) -> (i32, i32) {
    %c0_i32 = arith.constant 0 : i32
    %c0_i32_0 = arith.constant 0 : i32
    %c0_i32_1 = arith.constant 0 : i32
    return %c0_i32, %c0_i32_0 : i32, i32
  }
}

</mosaic_0001>

<bundles_post_ra>
// kernel: tpu_custom_call.1
= control target key start
LH: loop header
LB: loop body
LE: loop exit
PB: predicated region body
PF: predicated region fallthrough
CT: control target
= control target key end

     0   :  { %vm46_vm0 = vcmask 261120   ;;  %s2331_s0 = inlined_call_operand.vmem [shape: f32[32,640], index: 0, kind: input, shape index: {}]   ;;  %s2332_s1 = inlined_call_operand.vmem [shape: f32[16,32], index: 1, kind: input, shape index: {}]   ;;  %s2333_s2 = inlined_call_operand.vmem [shape: f32[6,8,8], index: 2, kind: input, shape index: {}]   ;;  %s2334_s3 = inlined_call_operand.vmem [shape: f32[2,8,1], index: 3, kind: input, shape index: {}]   ;;  %s2335_s4 = inlined_call_operand.vmem [shape: f32[2,1,640], index: 4, kind: input, shape index: {}]   ;;  %s2336_s5 = inlined_call_operand.vmem [shape: f32[640,160], index: 5, kind: input, shape index: {}]   ;;  %s2337_s6 = inlined_call_operand.hbm [shape: f32[8,160], index: 6, kind: output, shape index: {}]  }
   0x1   :  { %v41_v0 = vld [vmem:[%s2331_s0 + $0x78] sm:$0xff]  ;;  %v42_v1 = vld [vmem:[%s2331_s0 + $0x80] sm:$0xff]  ;;  %v36_v2 = vld [vmem:[%s2331_s0 + $0x50] sm:$0xff] }
   0x2   :  { %65 = vmatpush.msra.mxu2 %v41_v0  ;;  %88 = vmatpush.msra.mxu3 %v42_v1  ;;  %v37_v3 = vld [vmem:[%s2331_s0 + $0x58] sm:$0xff]  ;;  %v31_v4 = vld [vmem:[%s2331_s0 + $0x28] sm:$0xff]  ;;  %v32_v5 = vld [vmem:[%s2331_s0 + $0x30] sm:$0xff] }
   0x3   :  { %v26_v6 = vld [vmem:[%s2331_s0] sm:$0xff]  ;;  %v27_v7 = vld [vmem:[%s2331_s0 + $0x8] sm:$0xff]  ;;  %v44_v10 = vld [vmem:[%s2331_s0 + $0x90] sm:$0xff] }
   0x4   :  { %66 = vmatpush.msra.mxu2 %v36_v2  ;;  %89 = vmatpush.msra.mxu3 %v37_v3  ;;  %v24_v8 = vld [vmem:[%s2332_s1] sm:$0xff]  ;;  %v43_v9 = vld [vmem:[%s2331_s0 + $0x88] sm:$0xff]  ;;  %v45_v11 = vld [vmem:[%s2331_s0 + $0x98] sm:$0xff] }
   0x6   :  { %67 = vmatpush.msra.mxu2 %v31_v4  ;;  %90 = vmatpush.msra.mxu3 %v32_v5 }
   0x8   :  { %68 = vmatpush.msra.mxu2 %v26_v6  ;;  %91 = vmatpush.msra.mxu3 %v27_v7 }
   0x9   :  { %11 = vsyncpa [#allocation3], 0  ;;  %1415 = vmatmul.msk.f32.vlgmr.msra.gmra.mxu2 %vm46_vm0, %v24_v8  ;;  %1417 = vmatmul.msk.f32.vlgmr.msra.gmra.mxu3 %vm46_vm0, %v24_v8  ;;  %v38_v12 = vld [vmem:[%s2331_s0 + $0x60] sm:$0xff]  ;;  %v39_v13 = vld [vmem:[%s2331_s0 + $0x68] sm:$0xff]  ;;  %v1528_v42 = vmov 0   ;;  %s1530_s19 = smov 127  }
   0xa   :  { %111 = vmatpush.msrb.mxu2 %v43_v9  ;;  %134 = vmatpush.msrb.mxu3 %v44_v10  ;;  %v40_v14 = vld [vmem:[%s2331_s0 + $0x70] sm:$0xff]  ;;  %v33_v15 = vld [vmem:[%s2331_s0 + $0x38] sm:$0xff]  ;;  %v34_v16 = vld [vmem:[%s2331_s0 + $0x40] sm:$0xff]  ;;  %vm341_vm9 = vcmask 64512   ;;  %s1532_s23 = smov 126   ;;  %s1406_s17 = sshll.u32 %s2337_s6, 4  ;;  %s1407_s17 = int_to_ptr.hbm [resolvable:$true] %s1406_s17 }
   0xb   :  { %157 = vmatpush.msra.mxu0 %v45_v11  ;;  %v35_v17 = vld [vmem:[%s2331_s0 + $0x48] sm:$0xff]  ;;  %v28_v18 = vld [vmem:[%s2331_s0 + $0x10] sm:$0xff]  ;;  %v29_v19 = vld [vmem:[%s2331_s0 + $0x18] sm:$0xff]  ;;  %1468 = vset.pattern.permute.xlu1 %v1528_v42 }
   0xc   :  { %112 = vmatpush.msrb.mxu2 %v38_v12  ;;  %135 = vmatpush.msrb.mxu3 %v39_v13  ;;  %v25_v20 = vld [vmem:[%s2332_s1 + $0x8] sm:$0xff]  ;;  %v30_v21 = vld [vmem:[%s2331_s0 + $0x20] sm:$0xff] }
   0xd   :  { %158 = vmatpush.msra.mxu0 %v40_v14  ;;  %1489 = vset.pattern.permute.xlu0 %v1528_v42  ;;  %v200_v56 = vld [vmem:[%s2334_s3] sm:$0xff]  ;;  %v1425_v60 = vld [vmem:[%s2334_s3 + $0x8] sm:$0xff]  ;;  %s1529_s3 = smov 1  }
   0xe   :  { %113 = vmatpush.msrb.mxu2 %v33_v15  ;;  %136 = vmatpush.msrb.mxu3 %v34_v16 }
   0xf   :  { %159 = vmatpush.msra.mxu0 %v35_v17 }
  0x10   :  { %114 = vmatpush.msrb.mxu2 %v28_v18  ;;  %137 = vmatpush.msrb.mxu3 %v29_v19 }
  0x11   :  { %1416 = vmatmul.msk.f32.gmra.mxu2 %vm46_vm0, %v25_v20  ;;  %1418 = vmatmul.msk.f32.gmra.mxu3 %vm46_vm0, %v25_v20 }
  0x12   :  { %160 = vmatpush.msra.mxu0 %v30_v21 }
  0x13   :  { %1423 = vmatmul.msk.f32.vlgmr.msra.gmra.mxu0 %vm46_vm0, %v24_v8 }
  0x19   :  { %1419 = vmatmul.msk.f32.vlgmr.msrb.gmra.mxu2 %vm46_vm0, %v24_v8  ;;  %1421 = vmatmul.msk.f32.vlgmr.msrb.gmra.mxu3 %vm46_vm0, %v24_v8 }
  0x1b   :  { %1424 = vmatmul.msk.f32.gmra.mxu0 %vm46_vm0, %v25_v20 }
  0x21   :  { %1422 = vmatmul.msk.f32.gmra.mxu3 %vm46_vm0, %v25_v20  ;;  %1420 = vmatmul.msk.f32.gmra.mxu2 %vm46_vm0, %v25_v20 }
  0x8c   :  { %v70_v22 = vpop.f32.mrf.mxu2  ;;  %v93_v23 = vpop.f32.mrf.mxu3 }
  0x8d   :  { %v174_v26 = vmul.f32 %v70_v22, %v70_v22  ;;  %v168_v27 = vadd.f32 %v93_v23, %v70_v22  ;;  %v175_v28 = vmul.f32 %v93_v23, %v93_v23 }
  0x8f   :  { %v179_v34 = vadd.f32 %v175_v28, %v174_v26 }
  0x90   :  { %v162_v33 = vpop.f32.mrf.mxu0 }
  0x91   :  { %v178_v39 = vmul.f32 %v162_v33, %v162_v33 }
  0x94   :  { %v1645_v24 = vpop.f32.mrf.mxu2  ;;  %v1647_v25 = vpop.f32.mrf.mxu3 }
  0x9c   :  { %v116_v29 = vpop.f32.mrf.mxu2  ;;  %v139_v30 = vpop.f32.mrf.mxu3 }
  0x9d   :  { %v169_v31 = vadd.f32 %v168_v27, %v116_v29  ;;  %v176_v32 = vmul.f32 %v116_v29, %v116_v29  ;;  %v177_v36 = vmul.f32 %v139_v30, %v139_v30 }
  0x9f   :  { %v170_v35 = vadd.f32 %v169_v31, %v139_v30  ;;  %v180_v38 = vadd.f32 %v179_v34, %v176_v32 }
  0xa1   :  { %v171_v37 = vadd.f32 %v170_v35, %v162_v33  ;;  %v181_v40 = vadd.f32 %v180_v38, %v177_v36 }
  0xa3   :  { %172 = vadd.xlane.f32.xlu0 %v171_v37  ;;  %v182_v41 = vadd.f32 %v181_v40, %v178_v39 }
  0xab   :  { %183 = vadd.xlane.f32.xlu0 %v182_v41 }
 0x116   :  { %v173_v43 = vpop.xlane.xlu0 %172 }
 0x117   :  { %v185_v44 = vmul.f32 0.0018382353, %v173_v43 }
 0x119   :  { %v187_v46 = vmul.f32 %v185_v44, %v185_v44 }
 0x11e   :  { %v184_v45 = vpop.xlane.xlu0 %183 }
 0x11f   :  { %v186_v47 = vmul.f32 0.0018382353, %v184_v45 }
 0x121   :  { %v188_v48 = vsub.f32 %v186_v47, %v187_v46  ;;  %v336_v47 = vld [vmem:[%s2333_s2 + $0x8] sm:$0xff] }
 0x123   :  { %v189_v49 = vadd.f32 1e-05, %v188_v48  ;;  %v279_v48 = vlaneseq }
 0x125   :  { %1490 = vrsqrt.f32 %v189_v49  ;;  %vm196_vm2 = vweird.f32 %v189_v49 }
 0x12b   :  { %v1491_v50 = vpop.eup %1490 }
 0x12c   :  { %v191_v51 = vmul.f32 %v1491_v50, %v189_v49  ;;  %vm197_vm1 = vweird.f32 %v1491_v50 }
 0x12d   :  { %vm198_vm3 = vmor %vm196_vm2, %vm197_vm1 }
 0x12e   :  { %v192_v52 = vmul.f32 %v1491_v50, %v191_v51  ;;  %v266_v51 = vld [vmem:[%s2335_s4] sm:$0x1f] }
 0x130   :  { %v193_v53 = vmul.f32 0.5, %v192_v52  ;;  %v288_v52 = vperm.slane %v266_v51, 0 }
 0x132   :  { %v194_v54 = vsub.f32 1.5, %v193_v53 }
 0x134   :  { %v195_v55 = vmul.f32 %v1491_v50, %v194_v54 }
 0x136   :  { %v199_v57 = vsel %vm198_vm3, %v1491_v50, %v195_v55  ;;  %v1693_v50 = vand.u32 127, %v279_v48 }
 0x137   :  { %v201_v58 = vmul.f32 %v200_v56, %v199_v57  ;;  %v335_v56 = vld [vmem:[%s2333_s2] sm:$0xff]  ;;  %v289_v57 = vperm.slane %v266_v51, 1 }
 0x138   :  { %vm281_vm10 = vcmp.lt.s32.totalorder %v1693_v50, 1  ;;  %vm313_vm11 = vcmp.lt.s32.totalorder %v1693_v50, 127  ;;  %vm985_vm12 = vcmp.lt.s32.totalorder %v1693_v50, 112  ;;  %vm1026_vm13 = vcmp.lt.s32.totalorder %v1693_v50, 126  ;;  %v1150_v50 = vld [vmem:[%s2336_s5 + $0x388] sm:$0xff] }
 0x139   :  { %208 = vperm.xlu1 %1468, %v201_v58   ;;  %v204_v59 = vmul.f32 %v201_v58, %v185_v44 }
 0x13b   :  { %v205_v61 = vsub.f32 %v1425_v60, %v204_v59 }
 0x141   :  { %218 = vperm.xlu1 %1468, %v205_v61   ;;  %v290_v61 = vperm.slane %v266_v51, 2 }
 0x1ab   :  { %v209_v62 = vpop.permute.xlu1 %208 }
 0x1ac   :  { %v211_v63 = vmul.f32 %v209_v62, %v70_v22  ;;  %v212_v0 = vmul.f32 %v209_v62, %v93_v23  ;;  %v213_v1 = vmul.f32 %v209_v62, %v116_v29  ;;  %v214_v2 = vmul.f32 %v209_v62, %v139_v30 }
 0x1ad   :  { %v215_v3 = vmul.f32 %v209_v62, %v162_v33 }
 0x1b3   :  { %v219_v4 = vpop.permute.xlu1 %218 }
 0x1b4   :  { %v221_v5 = vadd.f32 %v219_v4, %v211_v63  ;;  %v222_v6 = vadd.f32 %v219_v4, %v212_v0  ;;  %v223_v7 = vadd.f32 %v219_v4, %v213_v1  ;;  %v224_v8 = vadd.f32 %v219_v4, %v214_v2 }
 0x1b5   :  { %v225_v9 = vadd.f32 %v219_v4, %v215_v3  ;;  %v292_v63 = vperm.slane %v266_v51, 4  ;;  %v291_v0 = vperm.slane %v266_v51, 3 }
 0x1b6   :  { %v226_v10 = vmin.f32 %v221_v5, 0.0  ;;  %v227_v11 = vmin.f32 %v222_v6, 0.0  ;;  %v228_v12 = vmin.f32 %v223_v7, 0.0  ;;  %v229_v13 = vmin.f32 %v224_v8, 0.0 }
 0x1b7   :  { %v230_v14 = vmin.f32 %v225_v9, 0.0  ;;  %vm251_vm4 = vcmp.gt.f32.partialorder %v221_v5, 0.0  ;;  %vm252_vm5 = vcmp.gt.f32.partialorder %v222_v6, 0.0  ;;  %vm253_vm6 = vcmp.gt.f32.partialorder %v223_v7, 0.0 }
 0x1b8   :  { %v231_v15 = vmul.f32 1.442695, %v226_v10  ;;  %v233_v16 = vmul.f32 1.442695, %v227_v11  ;;  %v235_v17 = vmul.f32 1.442695, %v228_v12 }
 0x1b9   :  { %v237_v18 = vmul.f32 1.442695, %v229_v13  ;;  %v239_v19 = vmul.f32 1.442695, %v230_v14  ;;  %vm254_vm7 = vcmp.gt.f32.partialorder %v224_v8, 0.0  ;;  %vm255_vm8 = vcmp.gt.f32.partialorder %v225_v9, 0.0 }
 0x1ba   :  { %1492 = vpow2.f32 %v231_v15 }
 0x1bb   :  { %1494 = vpow2.f32 %v233_v16 }
 0x1bc   :  { %1496 = vpow2.f32 %v235_v17 }
 0x1bd   :  { %1498 = vpow2.f32 %v237_v18 }
 0x1be   :  { %1500 = vpow2.f32 %v239_v19 }
 0x1c0   :  { %v1493_v20 = vpop.eup %1492 }
 0x1c1   :  { %v1495_v21 = vpop.eup %1494  ;;  %v1426_v22 = vadd.f32 -1.0, %v1493_v20 }
 0x1c2   :  { %v1497_v23 = vpop.eup %1496  ;;  %v1427_v26 = vadd.f32 -1.0, %v1495_v21 }
 0x1c3   :  { %v1499_v27 = vpop.eup %1498  ;;  %v1428_v28 = vadd.f32 -1.0, %v1497_v23  ;;  %v246_v29 = vmul.f32 1.6732632, %v1426_v22  ;;  %v337_v22 = vld [vmem:[%s2333_s2 + $0x10] sm:$0xff] }
 0x1c4   :  { %v1501_v30 = vpop.eup %1500  ;;  %v1429_v31 = vadd.f32 -1.0, %v1499_v27  ;;  %v247_v32 = vmul.f32 1.6732632, %v1427_v26 }
 0x1c5   :  { %v248_v33 = vmul.f32 1.6732632, %v1428_v28  ;;  %v256_v34 = vsel %vm251_vm4, %v221_v5, %v246_v29  ;;  %v1430_v35 = vadd.f32 -1.0, %v1501_v30 }
 0x1c6   :  { %v249_v36 = vmul.f32 1.6732632, %v1429_v31  ;;  %v257_v37 = vsel %vm252_vm5, %v222_v6, %v247_v32  ;;  %v1655_v38 = vmul.f32 1.050701, %v256_v34  ;;  %v339_v32 = vld [vmem:[%s2333_s2 + $0x20] sm:$0xff]  ;;  %v340_v34 = vld [vmem:[%s2333_s2 + $0x28] sm:$0xff] }
 0x1c7   :  { %v258_v39 = vsel %vm253_vm6, %v223_v7, %v248_v33  ;;  %v1657_v40 = vmul.f32 1.050701, %v257_v37  ;;  %v250_v41 = vmul.f32 1.6732632, %v1430_v35  ;;  %v338_v33 = vld [vmem:[%s2333_s2 + $0x18] sm:$0xff]  ;;  %v1768_v35 = vpop.f32.mrf.mxu3  ;;  %s1531_s2 = smov 112  }
 0x1c8   :  { %v259_v42 = vsel %vm254_vm7, %v224_v8, %v249_v36  ;;  %v1659_v43 = vmul.f32 1.050701, %v258_v39  ;;  %269 = vrot.lane.b32.xlu2 %v1655_v38, %s1529_s3  ;;  %360 = vmatpush.msra.mxu1 %v1655_v38  ;;  %v1770_v36 = vpop.f32.mrf.mxu2 }
 0x1c9   :  { %v1663_v44 = vmul.f32 1.050701, %v259_v42  ;;  %380 = vmatpush.msra.mxu2 %v1657_v40  ;;  %v260_v45 = vsel %vm255_vm8, %v225_v9, %v250_v41  ;;  %1432 = vmatmul.msk.f32.vlgmr.msra.gmra.mxu1 %vm341_vm9, %v336_v47  ;;  %v1431_v9 = vld [vmem:[%s2335_s4 + $0x5] sm:$0x1f] }
 0x1ca   :  { %273 = vrot.lane.b32.xlu0 %v1659_v43, %s1529_s3  ;;  %400 = vmatpush.msra.mxu3 %v1659_v43  ;;  %v1668_v46 = vmul.f32 1.050701, %v260_v45  ;;  %v323_v10 = vperm.slane %v1431_v9, 3  ;;  %v322_v11 = vperm.slane %v1431_v9, 2  ;;  %v321_v12 = vperm.slane %v1431_v9, 1 }
 0x1cb   :  { %275 = vrot.lane.b32.xlu1 %v1663_v44, %s1529_s3  ;;  %420 = vmatpush.msrb.mxu1 %v1663_v44  ;;  %v320_v23 = vperm.slane %v1431_v9, 0  ;;  %v324_v26 = vperm.slane %v1431_v9, 4 }
 0x1cc   :  { %440 = vmatpush.msrb.mxu2 %v1668_v46  ;;  %1434 = vmatmul.msk.f32.vlgmr.msra.gmra.mxu3 %vm341_vm9, %v336_v47 }
 0x1cd   :  { %1433 = vmatmul.msk.f32.vlgmr.msra.gmra.mxu2 %vm341_vm9, %v336_v47 }
 0x1d0   :  { %277 = vrot.lane.b32.xlu2 %v1668_v46, %s1529_s3 }
 0x1d1   :  { %1435 = vmatmul.msk.f32.vlgmr.msrb.gmra.mxu1 %vm341_vm9, %v336_v47 }
 0x1d2   :  { %311 = vrot.lane.b32.xlu0 %v1668_v46, %s1530_s19 }
 0x1d3   :  { %307 = vrot.lane.b32.xlu1 %v1659_v43, %s1530_s19 }
 0x1d5   :  { %1436 = vmatmul.msk.f32.vlgmr.msrb.gmra.mxu2 %vm341_vm9, %v336_v47 }
 0x1d8   :  { %271 = vrot.lane.b32.xlu2 %v1657_v40, %s1529_s3 }
 0x1db   :  { %303 = vrot.lane.b32.xlu1 %v1655_v38, %s1530_s19 }
 0x1e0   :  { %309 = vrot.lane.b32.xlu2 %v1663_v44, %s1530_s19 }
 0x1e8   :  { %305 = vrot.lane.b32.xlu2 %v1657_v40, %s1530_s19 }
 0x222   :  { %v270_v49 = vpop.permute.xlu2 %269 }
 0x22a   :  { %v278_v53 = vpop.permute.xlu2 %277 }
 0x22b   :  { %v286_v54 = vsel %vm281_vm10, %v278_v53, %v270_v49 }
 0x22c   :  { %v298_v55 = vmul.f32 %v288_v52, %v286_v54 }
 0x22e   :  { %463 = vmatpush.msrb.mxu3 %v298_v55 }
 0x22f   :  { %1437 = vmatmul.msk.f32.vlgmr.msrb.gmra.mxu3 %vm341_vm9, %v335_v56 }
 0x232   :  { %v272_v58 = vpop.permute.xlu2 %271 }
 0x233   :  { %v285_v59 = vsel %vm281_vm10, %v270_v49, %v272_v58 }
 0x234   :  { %v299_v60 = vmul.f32 %v289_v57, %v285_v59 }
 0x236   :  { %483 = vmatpush.msrb.mxu0 %v299_v60 }
 0x237   :  { %1438 = vmatmul.msk.f32.vlgmr.msrb.gmra.mxu0 %vm341_vm9, %v335_v56 }
 0x23a   :  { %v310_v62 = vpop.permute.xlu2 %309 }
 0x23c   :  { %v274_v1 = vpop.permute.xlu0 %273 }
 0x23d   :  { %v276_v2 = vpop.permute.xlu1 %275  ;;  %v284_v3 = vsel %vm281_vm10, %v272_v58, %v274_v1 }
 0x23e   :  { %v282_v4 = vsel %vm281_vm10, %v276_v2, %v278_v53  ;;  %v283_v5 = vsel %vm281_vm10, %v274_v1, %v276_v2  ;;  %v300_v6 = vmul.f32 %v290_v61, %v284_v3 }
 0x23f   :  { %v302_v7 = vmul.f32 %v292_v63, %v282_v4  ;;  %v301_v8 = vmul.f32 %v291_v0, %v283_v5 }
 0x240   :  { %503 = vmatpush.msra.mxu1 %v300_v6 }
 0x241   :  { %523 = vmatpush.msra.mxu2 %v301_v8  ;;  %543 = vmatpush.msra.mxu3 %v302_v7 }
 0x242   :  { %1439 = vmatmul.msk.f32.vlgmr.msra.gmra.mxu1 %vm341_vm9, %v335_v56  ;;  %1440 = vmatmul.msk.f32.vlgmr.msra.gmra.mxu2 %vm341_vm9, %v335_v56  ;;  %v306_v13 = vpop.permute.xlu2 %305 }
 0x243   :  { %1441 = vmatmul.msk.f32.vlgmr.msra.gmra.mxu3 %vm341_vm9, %v335_v56 }
 0x244   :  { %v312_v14 = vpop.permute.xlu0 %311 }
 0x245   :  { %v308_v15 = vpop.permute.xlu1 %307  ;;  %v314_v16 = vsel %vm313_vm11, %v310_v62, %v312_v14 }
 0x246   :  { %v315_v17 = vsel %vm313_vm11, %v308_v15, %v310_v62  ;;  %v333_v18 = vmul.f32 %v323_v10, %v314_v16  ;;  %v316_v19 = vsel %vm313_vm11, %v306_v13, %v308_v15  ;;  %v362_v39 = vpop.f32.mrf.mxu1 }
 0x247   :  { %v332_v20 = vmul.f32 %v322_v11, %v315_v17  ;;  %v331_v21 = vmul.f32 %v321_v12, %v316_v19 }
 0x248   :  { %626 = vmatpush.msrb.mxu3 %v333_v18 }
 0x249   :  { %586 = vmatpush.msrb.mxu1 %v331_v21  ;;  %606 = vmatpush.msrb.mxu2 %v332_v20 }
 0x24a   :  { %1443 = vmatmul.msk.f32.vlgmr.msrb.gmra.mxu1 %vm341_vm9, %v337_v22  ;;  %1444 = vmatmul.msk.f32.vlgmr.msrb.gmra.mxu2 %vm341_vm9, %v337_v22 }
 0x24b   :  { %1445 = vmatmul.msk.f32.vlgmr.msrb.gmra.mxu3 %vm341_vm9, %v337_v22  ;;  %674 = vmatpush.msra.mxu1 %v1655_v38  ;;  %v165_v38 = vpop.f32.mrf.mxu0 }
 0x24c   :  { %694 = vmatpush.msra.mxu2 %v1657_v40  ;;  %714 = vmatpush.msra.mxu3 %v1659_v43 }
 0x24d   :  { %754 = vmatpush.msrb.mxu1 %v1668_v46  ;;  %v304_v27 = vpop.permute.xlu1 %303 }
 0x24e   :  { %777 = vmatpush.msrb.mxu2 %v298_v55  ;;  %797 = vmatpush.msrb.mxu3 %v299_v60  ;;  %v317_v28 = vsel %vm313_vm11, %v304_v27, %v306_v13  ;;  %v318_v29 = vsel %vm313_vm11, %v312_v14, %v304_v27 }
 0x24f   :  { %v330_v30 = vmul.f32 %v320_v23, %v317_v28  ;;  %v334_v31 = vmul.f32 %v324_v26, %v318_v29  ;;  %v402_v37 = vpop.f32.mrf.mxu3  ;;  %v1067_v28 = vld [vmem:[%s2336_s5 + $0xf0] sm:$0xff]  ;;  %v1065_v29 = vld [vmem:[%s2336_s5 + $0xe0] sm:$0xff] }
 0x250   :  { %v382_v40 = vpop.f32.mrf.mxu2 }
 0x251   :  { %566 = vmatpush.msra.mxu0 %v330_v30 }
 0x252   :  { %1442 = vmatmul.msk.f32.vlgmr.msra.gmra.mxu0 %vm341_vm9, %v337_v22  ;;  %1447 = vmatmul.msk.f32.vlgmr.msra.gmra.mxu1 %vm341_vm9, %v339_v32 }
 0x253   :  { %646 = vmatpush.msrb.mxu0 %v334_v31  ;;  %1448 = vmatmul.msk.f32.vlgmr.msra.gmra.mxu2 %vm341_vm9, %v339_v32 }
 0x254   :  { %1449 = vmatmul.msk.f32.vlgmr.msra.gmra.mxu3 %vm341_vm9, %v339_v32  ;;  %837 = vmatpush.msra.mxu1 %v301_v8 }
 0x255   :  { %857 = vmatpush.msra.mxu2 %v302_v7  ;;  %880 = vmatpush.msra.mxu3 %v330_v30  ;;  %v1099_v30 = vld [vmem:[%s2336_s5 + $0x1f0] sm:$0xff] }
 0x256   :  { %734 = vmatpush.msra.mxu0 %v1663_v44  ;;  %v422_v44 = vpop.f32.mrf.mxu1 }
 0x258   :  { %v442_v46 = vpop.f32.mrf.mxu2 }
 0x25a   :  { %1446 = vmatmul.msk.f32.vlgmr.msrb.gmra.mxu0 %vm341_vm9, %v337_v22  ;;  %1451 = vmatmul.msk.f32.vlgmr.msrb.gmra.mxu1 %vm341_vm9, %v339_v32 }
 0x25b   :  { %1452 = vmatmul.msk.f32.vlgmr.msrb.gmra.mxu2 %vm341_vm9, %v338_v33  ;;  %817 = vmatpush.msrb.mxu0 %v300_v6 }
 0x25c   :  { %1453 = vmatmul.msk.f32.vlgmr.msrb.gmra.mxu3 %vm341_vm9, %v338_v33  ;;  %920 = vmatpush.msrb.mxu1 %v332_v20 }
 0x25d   :  { %940 = vmatpush.msrb.mxu2 %v333_v18  ;;  %960 = vmatpush.msrb.mxu3 %v334_v31  ;;  %v1097_v31 = vld [vmem:[%s2336_s5 + $0x1e0] sm:$0xff] }
 0x262   :  { %1450 = vmatmul.msk.f32.vlgmr.msra.gmra.mxu0 %vm341_vm9, %v339_v32  ;;  %1455 = vmatmul.msk.f32.vlgmr.msra.gmra.mxu1 %vm341_vm9, %v338_v33  ;;  %v1063_v32 = vld [vmem:[%s2336_s5 + $0xd0] sm:$0xff] }
 0x263   :  { %1456 = vmatmul.msk.f32.vlgmr.msra.gmra.mxu2 %vm341_vm9, %v338_v33  ;;  %900 = vmatpush.msra.mxu0 %v331_v21 }
 0x264   :  { %1457 = vmatmul.msk.f32.vlgmr.msra.gmra.mxu3 %vm341_vm9, %v340_v34  ;;  %1217 = vmatpush.msra.mxu1 %v1099_v30  ;;  %v1195_v30 = vld [vmem:[%s2336_s5 + $0x4f0] sm:$0xff] }
 0x266   :  { %1218 = vmatpush.msra.mxu1 %v1097_v31  ;;  %v1071_v31 = vld [vmem:[%s2336_s5 + $0x110] sm:$0xff] }
 0x26a   :  { %1454 = vmatmul.msk.f32.vlgmr.msrb.gmra.mxu0 %vm341_vm9, %v338_v33  ;;  %1459 = vmatmul.msk.f32.vlgmr.msrb.gmra.mxu1 %vm341_vm9, %v340_v34  ;;  %v1095_v33 = vld [vmem:[%s2336_s5 + $0x1d0] sm:$0xff] }
 0x26b   :  { %1460 = vmatmul.msk.f32.vlgmr.msrb.gmra.mxu2 %vm341_vm9, %v340_v34  ;;  %1197 = vmatpush.msrb.mxu0 %v1067_v28  ;;  %v1073_v28 = vld [vmem:[%s2336_s5 + $0x120] sm:$0xff] }
 0x26c   :  { %1461 = vmatmul.msk.f32.vlgmr.msrb.gmra.mxu3 %vm341_vm9, %v340_v34  ;;  %1219 = vmatpush.msra.mxu1 %v1095_v33  ;;  %v1149_v33 = vld [vmem:[%s2336_s5 + $0x380] sm:$0xff] }
 0x26d   :  { %1198 = vmatpush.msrb.mxu0 %v1065_v29  ;;  %v1037_v29 = vld [vmem:[%s2336_s5] sm:$0xff] }
 0x26f   :  { %1199 = vmatpush.msrb.mxu0 %v1063_v32  ;;  %v1117_v32 = vld [vmem:[%s2336_s5 + $0x280] sm:$0xff] }
 0x272   :  { %1458 = vmatmul.msk.f32.vlgmr.msra.gmra.mxu0 %vm341_vm9, %v340_v34  ;;  %v1061_v34 = vld [vmem:[%s2336_s5 + $0xc0] sm:$0xff] }
 0x273   :  { %1200 = vmatpush.msrb.mxu0 %v1061_v34  ;;  %v1193_v34 = vld [vmem:[%s2336_s5 + $0x4e0] sm:$0xff] }
 0x2b2   :  { %v465_v41 = vpop.f32.mrf.mxu3 }
 0x2b3   :  { %v466_v42 = vadd.f32 %v465_v41, %v362_v39  ;;  %v1131_v39 = vld [vmem:[%s2336_s5 + $0x2f0] sm:$0xff] }
 0x2b4   :  { %v485_v43 = vpop.f32.mrf.mxu0  ;;  %v1091_v41 = vld [vmem:[%s2336_s5 + $0x1b0] sm:$0xff]  ;;  %1237 = vmatpush.msra.mxu2 %v1131_v39 }
 0x2b5   :  { %v486_v45 = vadd.f32 %v485_v43, %v382_v40  ;;  %v1163_v40 = vld [vmem:[%s2336_s5 + $0x3f0] sm:$0xff]  ;;  %v1161_v43 = vld [vmem:[%s2336_s5 + $0x3e0] sm:$0xff] }
 0x2b6   :  { %1257 = vmatpush.msra.mxu3 %v1163_v40  ;;  %v1147_v39 = vld [vmem:[%s2336_s5 + $0x370] sm:$0xff] }
 0x2b7   :  { %v1191_v40 = vld [vmem:[%s2336_s5 + $0x4d0] sm:$0xff] }
 0x2b8   :  { %1258 = vmatpush.msra.mxu3 %v1161_v43  ;;  %v1145_v43 = vld [vmem:[%s2336_s5 + $0x360] sm:$0xff] }
 0x2bf   :  { %v505_v47 = vpop.f32.mrf.mxu1 }
 0x2c0   :  { %v506_v48 = vadd.f32 %v505_v47, %v402_v37  ;;  %v1093_v37 = vld [vmem:[%s2336_s5 + $0x1c0] sm:$0xff]  ;;  %v1159_v47 = vld [vmem:[%s2336_s5 + $0x3d0] sm:$0xff] }
 0x2c1   :  { %1220 = vmatpush.msra.mxu1 %v1093_v37  ;;  %1259 = vmatpush.msra.mxu3 %v1159_v47  ;;  %v1069_v37 = vld [vmem:[%s2336_s5 + $0x100] sm:$0xff]  ;;  %v1143_v47 = vld [vmem:[%s2336_s5 + $0x350] sm:$0xff] }
 0x2c3   :  { %1221 = vmatpush.msra.mxu1 %v1091_v41  ;;  %v1068_v41 = vld [vmem:[%s2336_s5 + $0xf8] sm:$0xff] }
 0x2c5   :  { %v525_v49 = vpop.f32.mrf.mxu2 }
 0x2c6   :  { %v526_v51 = vadd.f32 %v525_v49, %v422_v44  ;;  %v545_v52 = vpop.f32.mrf.mxu3  ;;  %v1057_v44 = vld [vmem:[%s2336_s5 + $0xa0] sm:$0xff]  ;;  %v1055_v49 = vld [vmem:[%s2336_s5 + $0x90] sm:$0xff] }
 0x2c7   :  { %v546_v53 = vadd.f32 %v545_v52, %v442_v46  ;;  %v588_v54 = vpop.f32.mrf.mxu1  ;;  %v1089_v46 = vld [vmem:[%s2336_s5 + $0x1a0] sm:$0xff]  ;;  %v1087_v52 = vld [vmem:[%s2336_s5 + $0x190] sm:$0xff] }
 0x2c8   :  { %v1772_v55 = vadd.f32 %v588_v54, %v486_v45  ;;  %v1127_v45 = vld [vmem:[%s2336_s5 + $0x2d0] sm:$0xff]  ;;  %1222 = vmatpush.msra.mxu1 %v1089_v46 }
 0x2c9   :  { %v1111_v46 = vld [vmem:[%s2336_s5 + $0x250] sm:$0xff] }
 0x2ca   :  { %1223 = vmatpush.msra.mxu1 %v1087_v52  ;;  %v1141_v52 = vld [vmem:[%s2336_s5 + $0x340] sm:$0xff] }
 0x2cd   :  { %v608_v56 = vpop.f32.mrf.mxu2 }
 0x2ce   :  { %v1774_v57 = vadd.f32 %v608_v56, %v506_v48  ;;  %v628_v58 = vpop.f32.mrf.mxu3  ;;  %v1053_v56 = vld [vmem:[%s2336_s5 + $0x80] sm:$0xff] }
 0x2cf   :  { %v1776_v59 = vadd.f32 %v628_v58, %v526_v51  ;;  %v568_v60 = vpop.f32.mrf.mxu0  ;;  %v676_v61 = vpop.f32.mrf.mxu1  ;;  %v1125_v51 = vld [vmem:[%s2336_s5 + $0x2c0] sm:$0xff]  ;;  %v1123_v58 = vld [vmem:[%s2336_s5 + $0x2b0] sm:$0xff] }
 0x2d0   :  { %v1778_v62 = vadd.f32 %v568_v60, %v466_v42  ;;  %v1129_v42 = vld [vmem:[%s2336_s5 + $0x2e0] sm:$0xff] }
 0x2d1   :  { %1238 = vmatpush.msra.mxu2 %v1129_v42  ;;  %v1113_v42 = vld [vmem:[%s2336_s5 + $0x260] sm:$0xff] }
 0x2d3   :  { %1239 = vmatpush.msra.mxu2 %v1127_v45  ;;  %v1066_v45 = vld [vmem:[%s2336_s5 + $0xe8] sm:$0xff] }
 0x2d5   :  { %1240 = vmatpush.msra.mxu2 %v1125_v51  ;;  %v1109_v51 = vld [vmem:[%s2336_s5 + $0x240] sm:$0xff] }
 0x2d6   :  { %v696_v63 = vpop.f32.mrf.mxu2 }
 0x2d7   :  { %v716_v0 = vpop.f32.mrf.mxu3  ;;  %v648_v1 = vpop.f32.mrf.mxu0  ;;  %1241 = vmatpush.msra.mxu2 %v1123_v58  ;;  %v1139_v58 = vld [vmem:[%s2336_s5 + $0x330] sm:$0xff] }
 0x2d8   :  { %v655_v2 = vadd.f32 %v648_v1, %v546_v53  ;;  %v756_v3 = vpop.f32.mrf.mxu1  ;;  %v1157_v53 = vld [vmem:[%s2336_s5 + $0x3c0] sm:$0xff]  ;;  %v970_v1 = vadd.f32 %v1778_v62, %v1645_v24 }
 0x2d9   :  { %1260 = vmatpush.msra.mxu3 %v1157_v53  ;;  %v1153_v24 = vld [vmem:[%s2336_s5 + $0x3a0] sm:$0xff] }
 0x2da   :  { %v1780_v4 = vadd.f32 %v655_v2, %v165_v38  ;;  %v1059_v38 = vld [vmem:[%s2336_s5 + $0xb0] sm:$0xff]  ;;  %v1185_v53 = vld [vmem:[%s2336_s5 + $0x4a0] sm:$0xff] }
 0x2db   :  { %1201 = vmatpush.msrb.mxu0 %v1059_v38  ;;  %v1115_v38 = vld [vmem:[%s2336_s5 + $0x270] sm:$0xff] }
 0x2dd   :  { %1202 = vmatpush.msrb.mxu0 %v1057_v44  ;;  %v1189_v44 = vld [vmem:[%s2336_s5 + $0x4c0] sm:$0xff] }
 0x2de   :  { %v779_v5 = vpop.f32.mrf.mxu2 }
 0x2df   :  { %v799_v6 = vpop.f32.mrf.mxu3  ;;  %v736_v7 = vpop.f32.mrf.mxu0  ;;  %v780_v9 = vadd.f32 %v779_v5, %v676_v61  ;;  %1203 = vmatpush.msrb.mxu0 %v1055_v49  ;;  %v1085_v61 = vld [vmem:[%s2336_s5 + $0x180] sm:$0xff]  ;;  %v1064_v49 = vld [vmem:[%s2336_s5 + $0xd8] sm:$0xff] }
 0x2e0   :  { %v839_v8 = vpop.f32.mrf.mxu1  ;;  %v800_v18 = vadd.f32 %v799_v6, %v696_v63  ;;  %v1155_v63 = vld [vmem:[%s2336_s5 + $0x3b0] sm:$0xff]  ;;  %v1121_v5 = vld [vmem:[%s2336_s5 + $0x2a0] sm:$0xff]  ;;  %1224 = vmatpush.msra.mxu1 %v1085_v61  ;;  %v1060_v61 = vld [vmem:[%s2336_s5 + $0xb8] sm:$0xff] }
 0x2e1   :  { %v840_v17 = vadd.f32 %v839_v8, %v736_v7  ;;  %1204 = vmatpush.msrb.mxu0 %v1053_v56  ;;  %v1049_v7 = vld [vmem:[%s2336_s5 + $0x60] sm:$0xff]  ;;  %1261 = vmatpush.msra.mxu3 %v1155_v63  ;;  %v1119_v8 = vld [vmem:[%s2336_s5 + $0x290] sm:$0xff] }
 0x2e2   :  { %1242 = vmatpush.msra.mxu2 %v1121_v5  ;;  %v1107_v56 = vld [vmem:[%s2336_s5 + $0x230] sm:$0xff]  ;;  %v1105_v63 = vld [vmem:[%s2336_s5 + $0x220] sm:$0xff] }
 0x2e3   :  { %1262 = vmatpush.msra.mxu3 %v1153_v24  ;;  %v1135_v5 = vld [vmem:[%s2336_s5 + $0x310] sm:$0xff]  ;;  %v1101_v24 = vld [vmem:[%s2336_s5 + $0x200] sm:$0xff] }
 0x2e4   :  { %1243 = vmatpush.msra.mxu2 %v1119_v8  ;;  %v1177_v8 = vld [vmem:[%s2336_s5 + $0x460] sm:$0xff] }
 0x2e6   :  { %v859_v10 = vpop.f32.mrf.mxu2  ;;  %1244 = vmatpush.msra.mxu2 %v1117_v32  ;;  %v1165_v32 = vld [vmem:[%s2336_s5 + $0x400] sm:$0xff] }
 0x2e7   :  { %v882_v11 = vpop.f32.mrf.mxu3  ;;  %v819_v12 = vpop.f32.mrf.mxu0  ;;  %v860_v26 = vadd.f32 %v859_v10, %v756_v3  ;;  %v1051_v3 = vld [vmem:[%s2336_s5 + $0x70] sm:$0xff] }
 0x2e8   :  { %v965_v13 = vadd.f32 %v882_v11, %v780_v9  ;;  %v820_v14 = vadd.f32 %v819_v12, %v716_v0  ;;  %v922_v15 = vpop.f32.mrf.mxu1  ;;  %v971_v0 = vadd.f32 %v1772_v55, %v1647_v25  ;;  %v1083_v25 = vld [vmem:[%s2336_s5 + $0x170] sm:$0xff]  ;;  %1205 = vmatpush.msrb.mxu0 %v1051_v3  ;;  %v1081_v11 = vld [vmem:[%s2336_s5 + $0x160] sm:$0xff]  ;;  %1245 = vmatpush.msra.mxu2 %v1115_v38  ;;  %v1040_v38 = vld [vmem:[%s2336_s5 + $0x18] sm:$0xff] }
 0x2e9   :  { %v1047_v10 = vld [vmem:[%s2336_s5 + $0x50] sm:$0xff]  ;;  %1225 = vmatpush.msra.mxu1 %v1083_v25  ;;  %v1056_v25 = vld [vmem:[%s2336_s5 + $0x98] sm:$0xff] }
 0x2ea   :  { %975 = vrot.lane.b32.xlu1 %v965_v13, %s1531_s2  ;;  %v967_v16 = vadd.f32 %v922_v15, %v820_v14  ;;  %1206 = vmatpush.msrb.mxu0 %v1049_v7  ;;  %v1151_v12 = vld [vmem:[%s2336_s5 + $0x390] sm:$0xff]  ;;  %v972_v13 = vadd.f32 %v1774_v57, %v1770_v36  ;;  %v973_v14 = vadd.f32 %v1776_v59, %v1768_v35  ;;  %v1133_v7 = vld [vmem:[%s2336_s5 + $0x300] sm:$0xff] }
 0x2eb   :  { %1226 = vmatpush.msra.mxu1 %v1081_v11  ;;  %1263 = vmatpush.msra.mxu3 %v1151_v12  ;;  %v1103_v3 = vld [vmem:[%s2336_s5 + $0x210] sm:$0xff]  ;;  %v1132_v11 = vld [vmem:[%s2336_s5 + $0x2f8] sm:$0xff] }
 0x2ec   :  { %979 = vrot.lane.b32.xlu0 %v967_v16, %s1531_s2  ;;  %1207 = vmatpush.msrb.mxu0 %v1047_v10  ;;  %v1100_v10 = vld [vmem:[%s2336_s5 + $0x1f8] sm:$0xff]  ;;  %v1175_v12 = vld [vmem:[%s2336_s5 + $0x450] sm:$0xff] }
 0x2ed   :  { %1264 = vmatpush.msra.mxu3 %v1149_v33  ;;  %1246 = vmatpush.msra.mxu2 %v1113_v42  ;;  %v1042_v33 = vld [vmem:[%s2336_s5 + $0x28] sm:$0xff]  ;;  %v1084_v42 = vld [vmem:[%s2336_s5 + $0x178] sm:$0xff] }
 0x2ee   :  { %v942_v19 = vpop.f32.mrf.mxu2 }
 0x2ef   :  { %v968_v20 = vadd.f32 %v942_v19, %v840_v17  ;;  %v902_v21 = vpop.f32.mrf.mxu0  ;;  %v962_v23 = vpop.f32.mrf.mxu3  ;;  %v1045_v17 = vld [vmem:[%s2336_s5 + $0x40] sm:$0xff]  ;;  %1265 = vmatpush.msra.mxu3 %v1147_v39  ;;  %1247 = vmatpush.msra.mxu2 %v1111_v46  ;;  %v1086_v39 = vld [vmem:[%s2336_s5 + $0x188] sm:$0xff]  ;;  %v1080_v46 = vld [vmem:[%s2336_s5 + $0x158] sm:$0xff] }
 0x2f0   :  { %v966_v22 = vadd.f32 %v902_v21, %v800_v18  ;;  %v969_v27 = vadd.f32 %v962_v23, %v860_v26  ;;  %v1079_v18 = vld [vmem:[%s2336_s5 + $0x150] sm:$0xff]  ;;  %v1077_v21 = vld [vmem:[%s2336_s5 + $0x140] sm:$0xff]  ;;  %1208 = vmatpush.msrb.mxu0 %v1045_v17  ;;  %v1050_v17 = vld [vmem:[%s2336_s5 + $0x68] sm:$0xff] }
 0x2f1   :  { %1227 = vmatpush.msra.mxu1 %v1079_v18  ;;  %v1041_v23 = vld [vmem:[%s2336_s5 + $0x20] sm:$0xff]  ;;  %v1075_v26 = vld [vmem:[%s2336_s5 + $0x130] sm:$0xff]  ;;  %1266 = vmatpush.msra.mxu3 %v1145_v43  ;;  %v1096_v18 = vld [vmem:[%s2336_s5 + $0x1d8] sm:$0xff] }
 0x2f2   :  { %981 = vrot.lane.b32.xlu1 %v968_v20, %s1531_s2  ;;  %977 = vrot.lane.b32.xlu2 %v966_v22, %s1531_s2  ;;  %v1043_v20 = vld [vmem:[%s2336_s5 + $0x30] sm:$0xff]  ;;  %v1116_v43 = vld [vmem:[%s2336_s5 + $0x278] sm:$0xff] }
 0x2f3   :  { %1209 = vmatpush.msrb.mxu0 %v1043_v20  ;;  %1228 = vmatpush.msra.mxu1 %v1077_v21  ;;  %v1094_v20 = vld [vmem:[%s2336_s5 + $0x1c8] sm:$0xff] }
 0x2f4   :  { %1267 = vmatpush.msra.mxu3 %v1143_v47  ;;  %1248 = vmatpush.msra.mxu2 %v1109_v51  ;;  %v1126_v21 = vld [vmem:[%s2336_s5 + $0x2c8] sm:$0xff]  ;;  %v1112_v47 = vld [vmem:[%s2336_s5 + $0x258] sm:$0xff] }
 0x2f5   :  { %1210 = vmatpush.msrb.mxu0 %v1041_v23  ;;  %1229 = vmatpush.msra.mxu1 %v1075_v26  ;;  %v1169_v23 = vld [vmem:[%s2336_s5 + $0x420] sm:$0xff]  ;;  %v1046_v26 = vld [vmem:[%s2336_s5 + $0x48] sm:$0xff]  ;;  %v1076_v51 = vld [vmem:[%s2336_s5 + $0x138] sm:$0xff] }
 0x2f6   :  { %1268 = vmatpush.msra.mxu3 %v1141_v52  ;;  %1249 = vmatpush.msra.mxu2 %v1107_v56  ;;  %v1108_v52 = vld [vmem:[%s2336_s5 + $0x238] sm:$0xff] }
 0x2f7   :  { %1230 = vmatpush.msra.mxu1 %v1073_v28  ;;  %v1167_v28 = vld [vmem:[%s2336_s5 + $0x410] sm:$0xff]  ;;  %v1072_v56 = vld [vmem:[%s2336_s5 + $0x118] sm:$0xff] }
 0x2f8   :  { %1269 = vmatpush.msra.mxu3 %v1139_v58  ;;  %1250 = vmatpush.msra.mxu2 %v1105_v63  ;;  %v1104_v58 = vld [vmem:[%s2336_s5 + $0x218] sm:$0xff] }
 0x2f9   :  { %1231 = vmatpush.msra.mxu1 %v1071_v31  ;;  %v1122_v31 = vld [vmem:[%s2336_s5 + $0x2a8] sm:$0xff] }
 0x2fa   :  { %983 = vrot.lane.b32.xlu2 %v969_v27, %s1531_s2  ;;  %1251 = vmatpush.msra.mxu2 %v1103_v3 }
 0x2fb   :  { %1232 = vmatpush.msra.mxu1 %v1069_v37  ;;  %v1120_v37 = vld [vmem:[%s2336_s5 + $0x298] sm:$0xff] }
 0x2fc   :  { %1252 = vmatpush.msra.mxu2 %v1101_v24 }
 0x2fd   :  { %1297 = vmatpush.msrb.mxu1 %v1068_v41  ;;  %v1038_v41 = vld [vmem:[%s2336_s5 + $0x8] sm:$0xff] }
 0x2fe   :  { %1317 = vmatpush.msrb.mxu2 %v1100_v10  ;;  %v1164_v10 = vld [vmem:[%s2336_s5 + $0x3f8] sm:$0xff] }
 0x2ff   :  { %1298 = vmatpush.msrb.mxu1 %v1066_v45  ;;  %v1114_v45 = vld [vmem:[%s2336_s5 + $0x268] sm:$0xff] }
 0x301   :  { %1299 = vmatpush.msrb.mxu1 %v1064_v49  ;;  %v1110_v49 = vld [vmem:[%s2336_s5 + $0x248] sm:$0xff] }
 0x34c   :  { %v978_v48 = vpop.permute.xlu2 %977 }
 0x354   :  { %v984_v15 = vpop.permute.xlu2 %983 }
 0x35c   :  { %v976_v54 = vpop.permute.xlu1 %975 }
 0x35d   :  { %v989_v60 = vsel %vm985_vm12, %v976_v54, %v978_v48  ;;  %v990_v36 = vsel %vm985_vm12, %v984_v15, %v976_v54  ;;  %v1062_v54 = vld [vmem:[%s2336_s5 + $0xc8] sm:$0xff] }
 0x35e   :  { %v980_v2 = vpop.permute.xlu0 %979  ;;  %v1881_v55 = vadd.f32 %v989_v60, %v970_v1  ;;  %v1930_v22 = vadd.f32 %v990_v36, %v1780_v4  ;;  %v1039_v4 = vld [vmem:[%s2336_s5 + $0x10] sm:$0xff]  ;;  %1300 = vmatpush.msrb.mxu1 %v1062_v54  ;;  %v1181_v1 = vld [vmem:[%s2336_s5 + $0x480] sm:$0xff]  ;;  %v1128_v36 = vld [vmem:[%s2336_s5 + $0x2d8] sm:$0xff] }
 0x35f   :  { %v988_v6 = vsel %vm985_vm12, %v978_v48, %v980_v2  ;;  %1211 = vmatpush.msrb.mxu0 %v1039_v4  ;;  %v1187_v48 = vld [vmem:[%s2336_s5 + $0x4b0] sm:$0xff]  ;;  %v1124_v4 = vld [vmem:[%s2336_s5 + $0x2b8] sm:$0xff]  ;;  %v1106_v54 = vld [vmem:[%s2336_s5 + $0x228] sm:$0xff] }
 0x360   :  { %v1883_v62 = vadd.f32 %v988_v6, %v971_v0  ;;  %v1183_v60 = vld [vmem:[%s2336_s5 + $0x490] sm:$0xff]  ;;  %v1137_v0 = vld [vmem:[%s2336_s5 + $0x320] sm:$0xff]  ;;  %1301 = vmatpush.msrb.mxu1 %v1060_v61  ;;  %v1102_v61 = vld [vmem:[%s2336_s5 + $0x208] sm:$0xff] }
 0x361   :  { %1212 = vmatpush.msrb.mxu0 %v1037_v29  ;;  %1270 = vmatpush.msra.mxu3 %v1137_v0  ;;  %v1179_v6 = vld [vmem:[%s2336_s5 + $0x470] sm:$0xff]  ;;  %v1044_v29 = vld [vmem:[%s2336_s5 + $0x38] sm:$0xff] }
 0x362   :  { %v1474_v9 = vpack.i.bf16 %v1883_v62, %v1881_v55 }
 0x363   :  { %1277 = vmatpush.msra.mxu0 %v1195_v30  ;;  %1271 = vmatpush.msra.mxu3 %v1135_v5  ;;  %v1090_v30 = vld [vmem:[%s2336_s5 + $0x1a8] sm:$0xff] }
 0x364   :  { %v982_v16 = vpop.permute.xlu1 %981  ;;  %1475 = vrot.lane.b32.xlu2 %v1474_v9, %s1532_s23  ;;  %1470 = vrot.lane.b32.xlu0 %v1474_v9, %s1530_s19  ;;  %v1054_v9 = vld [vmem:[%s2336_s5 + $0x88] sm:$0xff] }
 0x365   :  { %v986_v35 = vsel %vm985_vm12, %v982_v16, %v984_v15  ;;  %v987_v57 = vsel %vm985_vm12, %v980_v2, %v982_v16  ;;  %1278 = vmatpush.msra.mxu0 %v1193_v34  ;;  %v1058_v2 = vld [vmem:[%s2336_s5 + $0xa8] sm:$0xff]  ;;  %1272 = vmatpush.msra.mxu3 %v1133_v7  ;;  %v1173_v16 = vld [vmem:[%s2336_s5 + $0x440] sm:$0xff]  ;;  %v1088_v34 = vld [vmem:[%s2336_s5 + $0x198] sm:$0xff] }
 0x366   :  { %v1919_v59 = vadd.f32 %v987_v57, %v972_v13  ;;  %v1921_v19 = vadd.f32 %v986_v35, %v973_v14  ;;  %1302 = vmatpush.msrb.mxu1 %v1058_v2  ;;  %v1052_v13 = vld [vmem:[%s2336_s5 + $0x78] sm:$0xff]  ;;  %v1098_v14 = vld [vmem:[%s2336_s5 + $0x1e8] sm:$0xff]  ;;  %v1171_v35 = vld [vmem:[%s2336_s5 + $0x430] sm:$0xff] }
 0x367   :  { %1279 = vmatpush.msra.mxu0 %v1191_v40  ;;  %v1130_v15 = vld [vmem:[%s2336_s5 + $0x2e8] sm:$0xff]  ;;  %1337 = vmatpush.msrb.mxu3 %v1132_v11  ;;  %v1048_v57 = vld [vmem:[%s2336_s5 + $0x58] sm:$0xff] }
 0x368   :  { %1000 = vrot.lane.b32.xlu1 %v1919_v59, %s1530_s19  ;;  %v1484_v27 = vpack.i.bf16 %v1930_v22, %v1921_v19  ;;  %1303 = vmatpush.msrb.mxu1 %v1056_v25  ;;  %v1118_v40 = vld [vmem:[%s2336_s5 + $0x288] sm:$0xff] }
 0x369   :  { %1280 = vmatpush.msra.mxu0 %v1189_v44  ;;  %1318 = vmatpush.msrb.mxu2 %v1098_v14  ;;  %v1082_v44 = vld [vmem:[%s2336_s5 + $0x168] sm:$0xff] }
 0x36a   :  { %1304 = vmatpush.msrb.mxu1 %v1054_v9  ;;  %1338 = vmatpush.msrb.mxu3 %v1130_v15 }
 0x36b   :  { %1281 = vmatpush.msra.mxu0 %v1187_v48  ;;  %1319 = vmatpush.msrb.mxu2 %v1096_v18  ;;  %v1078_v48 = vld [vmem:[%s2336_s5 + $0x148] sm:$0xff] }
 0x36c   :  { %1020 = vrot.lane.b32.xlu0 %v1919_v59, %s1532_s23  ;;  %1485 = vrot.lane.b32.xlu2 %v1484_v27, %s1532_s23  ;;  %v1158_v18 = vld [vmem:[%s2336_s5 + $0x3c8] sm:$0xff] }
 0x36d   :  { %1282 = vmatpush.msra.mxu0 %v1185_v53  ;;  %1305 = vmatpush.msrb.mxu1 %v1052_v13  ;;  %v1074_v53 = vld [vmem:[%s2336_s5 + $0x128] sm:$0xff] }
 0x36e   :  { %1339 = vmatpush.msrb.mxu3 %v1128_v36  ;;  %1320 = vmatpush.msrb.mxu2 %v1094_v20  ;;  %v1194_v36 = vld [vmem:[%s2336_s5 + $0x4e8] sm:$0xff] }
 0x36f   :  { %1283 = vmatpush.msra.mxu0 %v1183_v60  ;;  %1306 = vmatpush.msrb.mxu1 %v1050_v17  ;;  %v1070_v60 = vld [vmem:[%s2336_s5 + $0x108] sm:$0xff] }
 0x370   :  { %1480 = vrot.lane.b32.xlu1 %v1484_v27, %s1530_s19  ;;  %1340 = vmatpush.msrb.mxu3 %v1126_v21  ;;  %v1092_v27 = vld [vmem:[%s2336_s5 + $0x1b8] sm:$0xff] }
 0x371   :  { %1284 = vmatpush.msra.mxu0 %v1181_v1  ;;  %1307 = vmatpush.msrb.mxu1 %v1048_v57 }
 0x372   :  { %1321 = vmatpush.msrb.mxu2 %v1092_v27  ;;  %1341 = vmatpush.msrb.mxu3 %v1124_v4 }
 0x373   :  { %1285 = vmatpush.msra.mxu0 %v1179_v6  ;;  %1308 = vmatpush.msrb.mxu1 %v1046_v26  ;;  %v1192_v26 = vld [vmem:[%s2336_s5 + $0x4d8] sm:$0xff] }
 0x374   :  { %1322 = vmatpush.msrb.mxu2 %v1090_v30  ;;  %1342 = vmatpush.msrb.mxu3 %v1122_v31 }
 0x375   :  { %1286 = vmatpush.msra.mxu0 %v1177_v8  ;;  %1309 = vmatpush.msrb.mxu1 %v1044_v29 }
 0x376   :  { %1323 = vmatpush.msrb.mxu2 %v1088_v34  ;;  %1343 = vmatpush.msrb.mxu3 %v1120_v37 }
 0x377   :  { %1287 = vmatpush.msra.mxu0 %v1175_v12  ;;  %1310 = vmatpush.msrb.mxu1 %v1042_v33  ;;  %v1190_v33 = vld [vmem:[%s2336_s5 + $0x4c8] sm:$0xff] }
 0x378   :  { %1324 = vmatpush.msrb.mxu2 %v1086_v39  ;;  %1344 = vmatpush.msrb.mxu3 %v1118_v40  ;;  %v1152_v39 = vld [vmem:[%s2336_s5 + $0x398] sm:$0xff] }
 0x379   :  { %1288 = vmatpush.msra.mxu0 %v1173_v16  ;;  %1311 = vmatpush.msrb.mxu1 %v1040_v38  ;;  %v1160_v16 = vld [vmem:[%s2336_s5 + $0x3d8] sm:$0xff] }
 0x37a   :  { %1325 = vmatpush.msrb.mxu2 %v1084_v42  ;;  %1345 = vmatpush.msrb.mxu3 %v1116_v43  ;;  %v1188_v40 = vld [vmem:[%s2336_s5 + $0x4b8] sm:$0xff] }
 0x37b   :  { %1289 = vmatpush.msra.mxu0 %v1171_v35  ;;  %1312 = vmatpush.msrb.mxu1 %v1038_v41  ;;  %v1186_v41 = vld [vmem:[%s2336_s5 + $0x4a8] sm:$0xff]  ;;  %v1148_v42 = vld [vmem:[%s2336_s5 + $0x378] sm:$0xff] }
 0x37c   :  { %1326 = vmatpush.msrb.mxu2 %v1082_v44  ;;  %1346 = vmatpush.msrb.mxu3 %v1114_v45  ;;  %v1184_v43 = vld [vmem:[%s2336_s5 + $0x498] sm:$0xff]  ;;  %v1146_v44 = vld [vmem:[%s2336_s5 + $0x368] sm:$0xff] }
 0x37d   :  { %1290 = vmatpush.msra.mxu0 %v1169_v23  ;;  %v1156_v23 = vld [vmem:[%s2336_s5 + $0x3b8] sm:$0xff]  ;;  %v1182_v45 = vld [vmem:[%s2336_s5 + $0x488] sm:$0xff] }
 0x37e   :  { %1327 = vmatpush.msrb.mxu2 %v1080_v46  ;;  %1347 = vmatpush.msrb.mxu3 %v1112_v47  ;;  %v1144_v46 = vld [vmem:[%s2336_s5 + $0x358] sm:$0xff] }
 0x37f   :  { %1291 = vmatpush.msra.mxu0 %v1167_v28  ;;  %v1180_v47 = vld [vmem:[%s2336_s5 + $0x478] sm:$0xff] }
 0x380   :  { %1328 = vmatpush.msrb.mxu2 %v1078_v48  ;;  %1348 = vmatpush.msrb.mxu3 %v1110_v49  ;;  %v1142_v48 = vld [vmem:[%s2336_s5 + $0x348] sm:$0xff] }
 0x381   :  { %1292 = vmatpush.msra.mxu0 %v1165_v32  ;;  %v1154_v32 = vld [vmem:[%s2336_s5 + $0x3a8] sm:$0xff] }
 0x382   :  { %1329 = vmatpush.msrb.mxu2 %v1076_v51  ;;  %1349 = vmatpush.msrb.mxu3 %v1108_v52  ;;  %v1178_v49 = vld [vmem:[%s2336_s5 + $0x468] sm:$0xff]  ;;  %v1140_v51 = vld [vmem:[%s2336_s5 + $0x338] sm:$0xff] }
 0x383   :  { %v1176_v52 = vld [vmem:[%s2336_s5 + $0x458] sm:$0xff] }
 0x384   :  { %1330 = vmatpush.msrb.mxu2 %v1074_v53  ;;  %1350 = vmatpush.msrb.mxu3 %v1106_v54  ;;  %v1138_v53 = vld [vmem:[%s2336_s5 + $0x328] sm:$0xff] }
 0x385   :  { %v1174_v54 = vld [vmem:[%s2336_s5 + $0x448] sm:$0xff] }
 0x386   :  { %1331 = vmatpush.msrb.mxu2 %v1072_v56  ;;  %1351 = vmatpush.msrb.mxu3 %v1104_v58  ;;  %v1136_v56 = vld [vmem:[%s2336_s5 + $0x318] sm:$0xff] }
 0x387   :  { %v1172_v58 = vld [vmem:[%s2336_s5 + $0x438] sm:$0xff] }
 0x388   :  { %1332 = vmatpush.msrb.mxu2 %v1070_v60  ;;  %1352 = vmatpush.msrb.mxu3 %v1102_v61  ;;  %v1134_v60 = vld [vmem:[%s2336_s5 + $0x308] sm:$0xff] }
 0x389   :  { %v1170_v61 = vld [vmem:[%s2336_s5 + $0x428] sm:$0xff] }
 0x3be   :  { %v1476_v63 = vpop.permute.xlu2 %1475 }
 0x3bf   :  { %v1478_v1 = vunpack.i.h.bf16 %v1476_v63  ;;  %v1477_v2 = vunpack.i.l.bf16 %v1476_v63  ;;  %v1168_v63 = vld [vmem:[%s2336_s5 + $0x418] sm:$0xff] }
 0x3c1   :  { %v1030_v7 = vsel %vm1026_vm13, %v1477_v2, %v1478_v1 }
 0x3c6   :  { %v1486_v14 = vpop.permute.xlu2 %1485 }
 0x3c7   :  { %v1488_v35 = vunpack.i.h.bf16 %v1486_v14  ;;  %v1487_v57 = vunpack.i.l.bf16 %v1486_v14 }
 0x3c9   :  { %v1031_v34 = vsel %vm1026_vm13, %v1488_v35, %v1477_v2  ;;  %v1027_v37 = vsel %vm1026_vm13, %v1487_v57, %v1488_v35 }
 0x3d6   :  { %v1471_v0 = vpop.permute.xlu0 %1470 }
 0x3d7   :  { %v1473_v3 = vunpack.i.h.bf16 %v1471_v0  ;;  %v1472_v5 = vunpack.i.l.bf16 %v1471_v0  ;;  %v1166_v0 = vld [vmem:[%s2336_s5 + $0x408] sm:$0xff] }
 0x3d9   :  { %v1009_v6 = vsel %vm313_vm11, %v1472_v5, %v1473_v3 }
 0x3da   :  { %v1011_v25 = vmax.f32 %v1881_v55, %v1009_v6  ;;  %v1001_v24 = vpop.permute.xlu1 %1000  ;;  %v1162_v55 = vld [vmem:[%s2336_s5 + $0x3e8] sm:$0xff] }
 0x3db   :  { %v1008_v8 = vsel %vm313_vm11, %v1473_v3, %v1001_v24 }
 0x3dc   :  { %v1032_v9 = vmax.f32 %v1011_v25, %v1030_v7  ;;  %v1012_v11 = vmax.f32 %v1883_v62, %v1008_v8  ;;  %v1196_v62 = vld [vmem:[%s2336_s5 + $0x4f8] sm:$0xff]  ;;  %s1533_s5 = smov [#allocation2]  }
 0x3dd   :  { %s1404_s16 = sshll.u32 %s1533_s5, 4  ;;  %s1405_s16 = int_to_ptr.vmem [resolvable:$true] %s1404_s16 }
 0x3de   :  { %1213 = vmatmul.f32.vlgmr.msrb.gmra.mxu0 %v1032_v9  ;;  %v1021_v12 = vpop.permute.xlu0 %1020 }
 0x3df   :  { %1357 = vmatpush.msrb.mxu0 %v1164_v10  ;;  %v1029_v13 = vsel %vm1026_vm13, %v1478_v1, %v1021_v12 }
 0x3e0   :  { %v1033_v15 = vmax.f32 %v1012_v11, %v1029_v13 }
 0x3e1   :  { %1358 = vmatpush.msrb.mxu0 %v1162_v55 }
 0x3e2   :  { %v1481_v17 = vpop.permute.xlu1 %1480  ;;  %1233 = vmatmul.f32.vlgmr.msra.gmra.mxu1 %v1033_v15 }
 0x3e3   :  { %v1483_v20 = vunpack.i.h.bf16 %v1481_v17  ;;  %v1482_v21 = vunpack.i.l.bf16 %v1481_v17  ;;  %1359 = vmatpush.msrb.mxu0 %v1160_v16  ;;  %1377 = vmatpush.msra.mxu1 %v1196_v62 }
 0x3e5   :  { %v1010_v27 = vsel %vm313_vm11, %v1483_v20, %v1472_v5  ;;  %v1006_v4 = vsel %vm313_vm11, %v1482_v21, %v1483_v20  ;;  %v1007_v28 = vsel %vm313_vm11, %v1001_v24, %v1482_v21  ;;  %1360 = vmatpush.msrb.mxu0 %v1158_v18  ;;  %1378 = vmatpush.msra.mxu1 %v1194_v36 }
 0x3e6   :  { %v1015_v29 = vmax.f32 %v1930_v22, %v1010_v27  ;;  %v1013_v30 = vmax.f32 %v1919_v59, %v1007_v28  ;;  %v1014_v31 = vmax.f32 %v1921_v19, %v1006_v4  ;;  %v1028_v22 = vsel %vm1026_vm13, %v1021_v12, %v1487_v57 }
 0x3e7   :  { %1361 = vmatpush.msrb.mxu0 %v1156_v23  ;;  %1379 = vmatpush.msra.mxu1 %v1192_v26 }
 0x3e8   :  { %v1034_v59 = vmax.f32 %v1013_v30, %v1028_v22  ;;  %v1035_v19 = vmax.f32 %v1014_v31, %v1027_v37  ;;  %v1036_v38 = vmax.f32 %v1015_v29, %v1031_v34 }
 0x3e9   :  { %1362 = vmatpush.msrb.mxu0 %v1154_v32  ;;  %1380 = vmatpush.msra.mxu1 %v1190_v33 }
 0x3ea   :  { %1253 = vmatmul.f32.vlgmr.msra.gmra.mxu2 %v1034_v59  ;;  %1273 = vmatmul.f32.vlgmr.msra.gmra.mxu3 %v1035_v19 }
 0x3eb   :  { %1293 = vmatmul.f32.vlgmr.msra.gmra.mxu0 %v1036_v38  ;;  %1313 = vmatmul.f32.vlgmr.msrb.gmra.mxu1 %v1032_v9 }
 0x3ec   :  { %1363 = vmatpush.msrb.mxu0 %v1152_v39  ;;  %1381 = vmatpush.msra.mxu1 %v1188_v40 }
 0x3ee   :  { %1364 = vmatpush.msrb.mxu0 %v1150_v50  ;;  %1382 = vmatpush.msra.mxu1 %v1186_v41 }
 0x3f0   :  { %1365 = vmatpush.msrb.mxu0 %v1148_v42  ;;  %1383 = vmatpush.msra.mxu1 %v1184_v43 }
 0x3f2   :  { %1333 = vmatmul.f32.vlgmr.msrb.gmra.mxu2 %v1033_v15  ;;  %1353 = vmatmul.f32.vlgmr.msrb.gmra.mxu3 %v1034_v59 }
 0x3f3   :  { %1366 = vmatpush.msrb.mxu0 %v1146_v44  ;;  %1384 = vmatpush.msra.mxu1 %v1182_v45 }
 0x3f5   :  { %1367 = vmatpush.msrb.mxu0 %v1144_v46  ;;  %1385 = vmatpush.msra.mxu1 %v1180_v47 }
 0x3f7   :  { %1368 = vmatpush.msrb.mxu0 %v1142_v48  ;;  %1386 = vmatpush.msra.mxu1 %v1178_v49 }
 0x3f9   :  { %1369 = vmatpush.msrb.mxu0 %v1140_v51  ;;  %1387 = vmatpush.msra.mxu1 %v1176_v52 }
 0x3fb   :  { %1370 = vmatpush.msrb.mxu0 %v1138_v53  ;;  %1388 = vmatpush.msra.mxu1 %v1174_v54 }
 0x3fd   :  { %1371 = vmatpush.msrb.mxu0 %v1136_v56  ;;  %1389 = vmatpush.msra.mxu1 %v1172_v58 }
 0x3ff   :  { %1372 = vmatpush.msrb.mxu0 %v1134_v60  ;;  %1390 = vmatpush.msra.mxu1 %v1170_v61 }
 0x400   :  { %1373 = vmatmul.f32.vlgmr.msrb.gmra.mxu0 %v1035_v19 }
 0x401   :  { %1391 = vmatpush.msra.mxu1 %v1168_v63 }
 0x403   :  { %1392 = vmatpush.msra.mxu1 %v1166_v0 }
 0x404   :  { %1393 = vmatmul.f32.vlgmr.msra.gmra.mxu1 %v1036_v38 }
 0x45b   :  { %v1214_v1 = vpop.f32.mrf.mxu0 }
 0x45f   :  { %v1234_v2 = vpop.f32.mrf.mxu1 }
 0x460   :  { %v1235_v3 = vadd.f32 %v1234_v2, %v1214_v1 }
 0x468   :  { %v1294_v7 = vpop.f32.mrf.mxu0  ;;  %v1314_v10 = vpop.f32.mrf.mxu1 }
 0x46d   :  { %v1254_v5 = vpop.f32.mrf.mxu2  ;;  %v1274_v25 = vpop.f32.mrf.mxu3 }
 0x46e   :  { %v1255_v6 = vadd.f32 %v1254_v5, %v1235_v3 }
 0x470   :  { %v1275_v24 = vadd.f32 %v1274_v25, %v1255_v6 }
 0x472   :  { %v1295_v8 = vadd.f32 %v1294_v7, %v1275_v24 }
 0x474   :  { %1397 = vst [vmem:[#allocation2] sm:$0xff] %v1295_v8 }
 0x475   :  { %v1334_v9 = vpop.f32.mrf.mxu2  ;;  %v1354_v12 = vpop.f32.mrf.mxu3 }
 0x476   :  { %v1335_v11 = vadd.f32 %v1334_v9, %v1314_v10 }
 0x478   :  { %v1355_v13 = vadd.f32 %v1354_v12, %v1335_v11 }
 0x47d   :  { %v1374_v55 = vpop.f32.mrf.mxu0 }
 0x47e   :  { %v1375_v14 = vadd.f32 %v1374_v55, %v1355_v13 }
 0x481   :  { %v1394_v15 = vpop.f32.mrf.mxu1 }
 0x482   :  { %v1395_v16 = vadd.f32 %v1394_v15, %v1375_v14 }
 0x484   :  { %1398 = vst.msk [vmem:[#allocation2 + $0x8] sm:$0xff] %vm46_vm0, %v1395_v16 }
 0x485   :  { %1409 = dma.vmem_to_hbm [thread:$0]  %s1405_s16, 256, %s1407_s17, [#allocation3]  }
 0x486   :  { %1526 = dma.done.wait [#allocation3], 256  }
 0x487   :  { %1527 = vsyncadd [#allocation3], 4294967040 }
 0x488   :  { %1414 = vsyncpa [#allocation3], 1 }

</bundles_post_ra>
